<compile_context>
chip_gen: v5e
topology: v5e:2x2
jax: 0.10.0
libtpu: 0.0.40
codegen_flags: <defaults>
</compile_context>

<pallas_src>
import functools
import math

import numpy as np
import jax
import jax.numpy as jnp
from jax.experimental import pallas as pl
from jax.experimental.pallas import tpu as pltpu


# ----------------------------------------------------------------------------
# Pallas kernels
# ----------------------------------------------------------------------------

def _mm_kernel(a_ref, b_ref, s_ref, t_ref, *rest, relu, has_resid):
    """Tiled matmul; epilogue: per-column affine (+ optional residual, ReLU)."""
    if has_resid:
        r_ref, o_ref, acc_ref = rest
    else:
        r_ref = None
        o_ref, acc_ref = rest

    @pl.when(pl.program_id(2) == 0)
    def _():
        acc_ref[...] = jnp.zeros_like(acc_ref)

    acc_ref[...] += jnp.dot(a_ref[...], b_ref[...],
                            preferred_element_type=jnp.float32)

    @pl.when(pl.program_id(2) == pl.num_programs(2) - 1)
    def _():
        y = acc_ref[...] * s_ref[...] + t_ref[...]
        if has_resid:
            y = y + r_ref[...]
        if relu:
            y = jnp.maximum(y, 0.0)
        o_ref[...] = y.astype(o_ref.dtype)


def _maxpool_kernel(p_ref, o_ref):
    # p_ref: (tm, 9, C) window values per output pixel; reduce max over axis 1.
    r = p_ref[:, 0, :]
    for k in range(1, p_ref.shape[1]):
        r = jnp.maximum(r, p_ref[:, k, :])
    o_ref[...] = r


# ----------------------------------------------------------------------------
# Tiling helpers + Pallas wrappers
# ----------------------------------------------------------------------------

def _round_up(x, m):
    return (x + m - 1) // m * m


def _largest_tile(total, cap, align):
    """Largest multiple-of-`align` divisor of `total` that is <= cap."""
    if total <= cap:
        return total
    t = (cap // align) * align
    while t > align:
        if total % t == 0:
            return t
        t -= align
    return align


def matmul_affine(a, w, scale, shift, n_true, residual=None, relu=False,
                  cap_m=1024, cap_n=1024, cap_k=4096):
    """out[:M, :n_true] = relu?( a @ w * scale + shift (+ residual) ).

    `w`, `scale`, `shift` are pre-padded to (Kp, Np) / (1, Np) with Kp, Np multiples
    of 128 (done once at init).  `a` is (M, K) with K <= Kp; it is cast to bf16 and
    padded here.  Accumulation is f32 in a VMEM scratch.
    """
    M, K = a.shape
    Kp, Np = w.shape

    Mp0 = _round_up(max(M, 1), 8)
    tm = Mp0 if Mp0 <= cap_m else cap_m
    Mp = _round_up(M, tm)
    tk = _largest_tile(Kp, cap_k, 128)
    tn = _largest_tile(Np, cap_n, 128)

    a_p = a.astype(jnp.bfloat16)
    if (Mp, Kp) != (M, K):
        a_p = jnp.pad(a_p, ((0, Mp - M), (0, Kp - K)))

    inputs = [a_p, w, scale, shift]
    in_specs = [
        pl.BlockSpec((tm, tk), lambda i, j, k: (i, k)),
        pl.BlockSpec((tk, tn), lambda i, j, k: (k, j)),
        pl.BlockSpec((1, tn), lambda i, j, k: (0, j)),
        pl.BlockSpec((1, tn), lambda i, j, k: (0, j)),
    ]
    if residual is not None:
        r = residual.astype(jnp.float32)
        if r.shape != (Mp, Np):
            r = jnp.pad(r, ((0, Mp - r.shape[0]), (0, Np - r.shape[1])))
        inputs.append(r)
        in_specs.append(pl.BlockSpec((tm, tn), lambda i, j, k: (i, j)))

    kernel = functools.partial(_mm_kernel, relu=relu,
                               has_resid=residual is not None)
    out = pl.pallas_call(
        kernel,
        out_shape=jax.ShapeDtypeStruct((Mp, Np), jnp.float32),
        grid_spec=pltpu.PrefetchScalarGridSpec(
            num_scalar_prefetch=0,
            grid=(Mp // tm, Np // tn, Kp // tk),
            in_specs=in_specs,
            out_specs=pl.BlockSpec((tm, tn), lambda i, j, k: (i, j)),
            scratch_shapes=[pltpu.VMEM((tm, tn), jnp.float32)],
        ),
        compiler_params=pltpu.CompilerParams(
            dimension_semantics=("parallel", "parallel", "arbitrary"),
            vmem_limit_bytes=32 * 1024 * 1024),
    )(*inputs)
    return out[:M, :n_true]


def conv2d(x, layer, stride, padding, relu=False, residual=None):
    """NHWC conv (cross-correlation, PyTorch semantics) via im2col + fused Pallas matmul.

    `residual`, if given, is a (N*Ho*Wo, Cout) array added before the ReLU (fused
    BasicBlock merge)."""
    N, H, W, Cin = x.shape
    KH, KW, Cout = layer['kh'], layer['kw'], layer['cout']
    assert Cin == layer['cin']
    if padding:
        x = jnp.pad(x, ((0, 0), (padding, padding), (padding, padding), (0, 0)))
    Hp, Wp = H + 2 * padding, W + 2 * padding
    Ho = (Hp - KH) // stride + 1
    Wo = (Wp - KW) // stride + 1

    # TODO(synk): im2col still materializes KH*KW duplicated activation slabs; a
    # shifted-window index_map on the raw NHWC activation would remove this traffic.
    cols = []
    for di in range(KH):
        for dj in range(KW):
            cols.append(x[:, di:di + stride * Ho:stride, dj:dj + stride * Wo:stride, :])
    if len(cols) > 1:
        pat = jnp.concatenate(cols, axis=-1).reshape(N * Ho * Wo, KH * KW * Cin)
    else:
        pat = cols[0].reshape(N * Ho * Wo, Cin)

    out = matmul_affine(pat, layer['w'], layer['scale'], layer['shift'],
                        n_true=Cout, residual=residual, relu=relu)
    return out.reshape(N, Ho, Wo, Cout)


def maxpool_3x3_s2_p1(x):
    """MaxPool2d(kernel_size=3, stride=2, padding=1); reduction done in Pallas."""
    N, H, W, C = x.shape
    neg = jnp.finfo(x.dtype).min
    xp = jnp.pad(x, ((0, 0), (1, 1), (1, 1), (0, 0)), constant_values=neg)
    Ho = (H + 2 - 3) // 2 + 1
    Wo = (W + 2 - 3) // 2 + 1
    cols = [xp[:, di:di + 2 * Ho:2, dj:dj + 2 * Wo:2, :]
            for di in range(3) for dj in range(3)]
    pat = jnp.stack(cols, axis=3).reshape(N * Ho * Wo, 9, C)

    M = N * Ho * Wo
    tm = min(512, _round_up(M, 8))
    Mp = _round_up(M, tm)
    if Mp != M:
        pat = jnp.pad(pat, ((0, Mp - M), (0, 0), (0, 0)))

    out = pl.pallas_call(
        _maxpool_kernel,
        out_shape=jax.ShapeDtypeStruct((Mp, C), x.dtype),
        grid_spec=pltpu.PrefetchScalarGridSpec(
            num_scalar_prefetch=0,
            grid=(Mp // tm,),
            in_specs=[pl.BlockSpec((tm, 9, C), lambda i: (i, 0, 0))],
            out_specs=pl.BlockSpec((tm, C), lambda i: (i, 0)),
        ),
        compiler_params=pltpu.CompilerParams(dimension_semantics=("parallel",)),
    )(pat)
    return out[:M].reshape(N, Ho, Wo, C)


def conv_transpose2d(x, layer, stride):
    """ConvTranspose2d (no bias, no padding): per-pixel Pallas matmul + overlap-add."""
    N, Hi, Wi, Cin = x.shape
    K, Cout = layer['k'], layer['cout']
    a = x.reshape(N * Hi * Wi, Cin)
    P = matmul_affine(a, layer['w'], layer['scale'], layer['shift'],
                      n_true=layer['ncols'], relu=False)
    P = P.reshape(N, Hi, Wi, K, K, Cout)

    Ho = (Hi - 1) * stride + K
    Wo = (Wi - 1) * stride + K
    out = jnp.zeros((N, Ho, Wo, Cout), jnp.float32)
    # TODO(synk): Hi*Wi here is 4 (fine); for large inputs this overlap-add should
    # become a single Pallas scatter-accumulate kernel.
    for i in range(Hi):
        for j in range(Wi):
            out = out.at[:, i * stride:i * stride + K,
                         j * stride:j * stride + K, :].add(P[:, i, j])
    return out


# ----------------------------------------------------------------------------
# Parameter construction (deterministic, synthetic; matmul-ready layout)
# ----------------------------------------------------------------------------

def get_upsampling_weight(in_channels, out_channels, kernel_size):
    factor = (kernel_size + 1) // 2
    if kernel_size % 2 == 1:
        center = factor - 1
    else:
        center = factor - 0.5
    og0 = np.arange(kernel_size).reshape(-1, 1)
    og1 = np.arange(kernel_size).reshape(1, -1)
    filt = (1 - abs(og0 - center) / factor) * (1 - abs(og1 - center) / factor)
    weight = np.zeros((in_channels, out_channels, kernel_size, kernel_size),
                      dtype=np.float32)
    weight[range(in_channels), range(out_channels), :, :] = filt
    return jnp.asarray(weight)


def kaiming_oihw(key, cout, cin, kh, kw):
    # kaiming_normal, mode='fan_out' (matches the PyTorch __init__ loop)
    std = math.sqrt(2.0 / (cout * kh * kw))
    return (std * jax.random.normal(key, (cout, cin, kh, kw))).astype(jnp.float32)


def bn_affine(c, eps=1e-5):
    # Inference-mode BN with default init: gamma=1, beta=0, running mean=0, var=1.
    scale = jnp.full((c,), 1.0 / math.sqrt(1.0 + eps), jnp.float32)
    shift = jnp.zeros((c,), jnp.float32)
    return scale, shift


def make_conv(w_oihw, scale, shift):
    """Pre-reshape + pre-pad a conv weight to [Kp, Np] bf16 matmul form (done once)."""
    Cout, Cin, KH, KW = w_oihw.shape
    K = KH * KW * Cin
    Kp = _round_up(K, 128)
    Np = _round_up(Cout, 128)
    w = jnp.transpose(w_oihw, (2, 3, 1, 0)).reshape(K, Cout)
    w = jnp.pad(w, ((0, Kp - K), (0, Np - Cout))).astype(jnp.bfloat16)
    sc = jnp.pad(scale.astype(jnp.float32), (0, Np - Cout)).reshape(1, Np)
    sh = jnp.pad(shift.astype(jnp.float32), (0, Np - Cout)).reshape(1, Np)
    return dict(w=w, scale=sc, shift=sh, cout=Cout, cin=Cin, kh=KH, kw=KW)


def make_deconv(w_iokk):
    Cin, Cout, K, K2 = w_iokk.shape
    assert K == K2
    ncols = K * K * Cout
    Kp = _round_up(Cin, 128)
    Np = _round_up(ncols, 128)
    w = jnp.transpose(w_iokk, (0, 2, 3, 1)).reshape(Cin, ncols)
    w = jnp.pad(w, ((0, Kp - Cin), (0, Np - ncols))).astype(jnp.bfloat16)
    return dict(w=w, scale=jnp.ones((1, Np), jnp.float32),
                shift=jnp.zeros((1, Np), jnp.float32),
                cin=Cin, cout=Cout, k=K, ncols=ncols)


def init_params(key, n_class=21, layers=(1, 1, 1, 1)):
    ks = jax.random.split(key, 64)
    ki = iter(ks)
    p = {}
    s, b = bn_affine(64)
    p['conv1'] = make_conv(kaiming_oihw(next(ki), 64, 3, 7, 7), s, b)

    inplanes = 64
    for li, (planes, nblocks, stride) in enumerate(
            zip((64, 128, 256, 512), layers, (1, 2, 2, 2)), start=1):
        blocks = []
        for bi in range(nblocks):
            st = stride if bi == 0 else 1
            s1, b1 = bn_affine(planes)
            s2, b2 = bn_affine(planes)
            blk = dict(
                c1=make_conv(kaiming_oihw(next(ki), planes, inplanes, 3, 3), s1, b1),
                c2=make_conv(kaiming_oihw(next(ki), planes, planes, 3, 3), s2, b2),
                stride=st)
            if st != 1 or inplanes != planes:
                sd, bd = bn_affine(planes)
                blk['ds'] = make_conv(
                    kaiming_oihw(next(ki), planes, inplanes, 1, 1), sd, bd)
            blocks.append(blk)
            inplanes = planes
        p[f'layer{li}'] = blocks

    # fc layers: scale=1, shift=bias (bias zero-initialized, as in the module).
    p['fc6'] = make_conv(kaiming_oihw(next(ki), 4096, 512, 7, 7),
                         jnp.ones((4096,), jnp.float32), jnp.zeros((4096,), jnp.float32))
    p['fc7'] = make_conv(kaiming_oihw(next(ki), 4096, 4096, 1, 1),
                         jnp.ones((4096,), jnp.float32), jnp.zeros((4096,), jnp.float32))
    p['score_fr'] = make_conv(kaiming_oihw(next(ki), n_class, 4096, 1, 1),
                              jnp.ones((n_class,), jnp.float32),
                              jnp.zeros((n_class,), jnp.float32))
    # score_4 is applied to (h * 0.01): fold the 0.01 into the epilogue scale.
    p['score_4'] = make_conv(kaiming_oihw(next(ki), n_class, 512, 1, 1),
                             jnp.full((n_class,), 0.01, jnp.float32),
                             jnp.zeros((n_class,), jnp.float32))
    p['upscore16'] = make_deconv(get_upsampling_weight(n_class, n_class, 32))
    return p


# ----------------------------------------------------------------------------
# Forward pass
# ----------------------------------------------------------------------------

def basic_block_fwd(x, blk):
    out = conv2d(x, blk['c1'], stride=blk['stride'], padding=1, relu=True)
    if 'ds' in blk:
        identity = conv2d(x, blk['ds'], stride=blk['stride'], padding=0, relu=False)
    else:
        identity = x
    C = identity.shape[-1]
    # conv2 + bn2 + residual add + ReLU, all fused in the matmul epilogue.
    return conv2d(out, blk['c2'], stride=1, padding=1, relu=True,
                  residual=identity.reshape(-1, C))


def resnet16s_forward(x_nchw, p, n_class=21):
    x = jnp.transpose(x_nchw, (0, 2, 3, 1)).astype(jnp.float32)  # -> NHWC

    # pad_layer = ZeroPad2d(100)
    h = jnp.pad(x, ((0, 0), (100, 100), (100, 100), (0, 0)))
    # conv1 + bn1 + relu (BN folded into the epilogue, inference mode)
    h = conv2d(h, p['conv1'], stride=2, padding=3, relu=True)
    # maxpool 3x3 / stride 2 / pad 1
    h = maxpool_3x3_s2_p1(h)
    # layer1..layer4
    for name in ('layer1', 'layer2', 'layer3', 'layer4'):
        for blk in p[name]:
            h = basic_block_fwd(h, blk)

    # h_4 = score_4(h * 0.01)   (0.01 folded into score_4's scale)
    h4 = conv2d(h, p['score_4'], stride=1, padding=0, relu=False)

    # fc6 -> relu -> drop6 -> fc7 -> relu -> drop7 -> score_fr
    # TODO(synk): Dropout2d is the identity here (inference semantics).
    h = conv2d(h, p['fc6'], stride=1, padding=0, relu=True)
    h = conv2d(h, p['fc7'], stride=1, padding=0, relu=True)
    h = conv2d(h, p['score_fr'], stride=1, padding=0, relu=False)

    upscore_2 = h
    H2, W2 = upscore_2.shape[1], upscore_2.shape[2]
    score_4c = h4[:, 5:5 + H2, 5:5 + W2, :]
    h = upscore_2 + score_4c

    # upscore16: ConvTranspose2d(n_class, n_class, 32, stride=16, bias=False)
    h = conv_transpose2d(h, p['upscore16'], stride=16)

    # final crop (clamped slicing, same as torch tensor slicing)
    Hx, Wx = x_nchw.shape[2], x_nchw.shape[3]
    h = h[:, 27:27 + Hx, 27:27 + Wx, :]
    return jnp.transpose(h, (0, 3, 1, 2))  # back to NCHW


# ----------------------------------------------------------------------------

if __name__ == "__main__":
    key = jax.random.PRNGKey(0)
    pkey, xkey = jax.random.split(key)

    n_class = 21
    params = init_params(pkey, n_class=n_class, layers=(1, 1, 1, 1))

    x = jax.random.normal(xkey, (1, 3, 32, 32), jnp.float32)  # NCHW, like PyTorch
    out = resnet16s_forward(x, params, n_class=n_class)
    out = jax.block_until_ready(out)

    assert out.ndim == 4 and out.shape[0] == 1 and out.shape[1] == n_class
    assert bool(jnp.all(jnp.isfinite(out)))
    print("KERNEL_OK")
</pallas_src>

<mosaic_0001>
module attributes {stable_mosaic.version = 11 : i64} {
  func.func @_mm_kernel(%arg0: i32, %arg1: i32, %arg2: i32, %arg3: memref<1024x256xbf16, #tpu.memory_space<vmem>>, %arg4: memref<256x128xbf16, #tpu.memory_space<vmem>>, %arg5: memref<1x128xf32, #tpu.memory_space<vmem>>, %arg6: memref<1x128xf32, #tpu.memory_space<vmem>>, %arg7: memref<1024x128xf32, #tpu.memory_space<vmem>>, %arg8: memref<1024x128xf32, #tpu.memory_space<vmem>>) attributes {dimension_semantics = [#tpu.dimension_semantics<parallel>, #tpu.dimension_semantics<parallel>, #tpu.dimension_semantics<arbitrary>], iteration_bounds = array<i64: 14, 1, 1>, scalar_prefetch = 0 : i64, scratch_operands = 1 : i64, tpu.core_type = #tpu.core_type<tc>, window_params = [{transform_indices = @transform_0, window_bounds = array<i64: 1024, 256>}, {transform_indices = @transform_1, window_bounds = array<i64: 256, 128>}, {transform_indices = @transform_2, window_bounds = array<i64: 1, 128>}, {transform_indices = @transform_3, window_bounds = array<i64: 1, 128>}, {transform_indices = @transform_4, window_bounds = array<i64: 1024, 128>}]} {
    %c0_i32 = arith.constant 0 : i32
    %0 = arith.cmpi eq, %arg2, %c0_i32 : i32
    %1 = arith.extui %0 : i1 to i32
    %c0_i32_0 = arith.constant 0 : i32
    %2 = arith.cmpi ne, %1, %c0_i32_0 : i32
    scf.if %2 {
      %cst_10 = arith.constant 0.000000e+00 : f32
      %12 = vector.broadcast %cst_10 : f32 to vector<1024x128xf32>
      %c0_11 = arith.constant 0 : index
      %c0_12 = arith.constant 0 : index
      %13 = vector.load %arg8[%c0_11, %c0_12] : memref<1024x128xf32, #tpu.memory_space<vmem>>, vector<1024x128xf32>
      tpu.vector_store %arg8[%c0_11, %c0_12], %12 {strides = array<i32>} : memref<1024x128xf32, #tpu.memory_space<vmem>>, vector<1024x128xf32>,
    } else {
    }
    %c0 = arith.constant 0 : index
    %c0_1 = arith.constant 0 : index
    %3 = vector.load %arg8[%c0, %c0_1] : memref<1024x128xf32, #tpu.memory_space<vmem>>, vector<1024x128xf32>
    %c0_2 = arith.constant 0 : index
    %c0_3 = arith.constant 0 : index
    %4 = vector.load %arg3[%c0_2, %c0_3] : memref<1024x256xbf16, #tpu.memory_space<vmem>>, vector<1024x256xbf16>
    %c0_4 = arith.constant 0 : index
    %c0_5 = arith.constant 0 : index
    %5 = vector.load %arg4[%c0_4, %c0_5] : memref<256x128xbf16, #tpu.memory_space<vmem>>, vector<256x128xbf16>
    %cst = arith.constant dense<0.000000e+00> : vector<1024x128xf32>
    %6 = tpu.matmul %4, %5, %cst {dimension_numbers = #tpu.dot_dimension_numbers<[1], [0], [0], [1], [0, 0, 1, 1], [], []>} : vector<1024x256xbf16>, vector<256x128xbf16>, vector<1024x128xf32> -> vector<1024x128xf32>
    %7 = arith.addf %3, %6 : vector<1024x128xf32>
    %c0_6 = arith.constant 0 : index
    %c0_7 = arith.constant 0 : index
    %8 = vector.load %arg8[%c0_6, %c0_7] : memref<1024x128xf32, #tpu.memory_space<vmem>>, vector<1024x128xf32>
    tpu.vector_store %arg8[%c0_6, %c0_7], %7 {strides = array<i32>} : memref<1024x128xf32, #tpu.memory_space<vmem>>, vector<1024x128xf32>,
    %c0_i32_8 = arith.constant 0 : i32
    %9 = arith.cmpi eq, %arg2, %c0_i32_8 : i32
    %10 = arith.extui %9 : i1 to i32
    %c0_i32_9 = arith.constant 0 : i32
    %11 = arith.cmpi ne, %10, %c0_i32_9 : i32
    scf.if %11 {
      %c0_10 = arith.constant 0 : index
      %c0_11 = arith.constant 0 : index
      %12 = vector.load %arg8[%c0_10, %c0_11] : memref<1024x128xf32, #tpu.memory_space<vmem>>, vector<1024x128xf32>
      %c0_12 = arith.constant 0 : index
      %c0_13 = arith.constant 0 : index
      %13 = vector.load %arg5[%c0_12, %c0_13] : memref<1x128xf32, #tpu.memory_space<vmem>>, vector<1x128xf32>
      %14 = vector.broadcast %13 : vector<1x128xf32> to vector<1024x128xf32>
      %15 = arith.mulf %12, %14 : vector<1024x128xf32>
      %c0_14 = arith.constant 0 : index
      %c0_15 = arith.constant 0 : index
      %16 = vector.load %arg6[%c0_14, %c0_15] : memref<1x128xf32, #tpu.memory_space<vmem>>, vector<1x128xf32>
      %17 = vector.broadcast %16 : vector<1x128xf32> to vector<1024x128xf32>
      %18 = arith.addf %15, %17 : vector<1024x128xf32>
      %cst_16 = arith.constant 0.000000e+00 : f32
      %19 = vector.broadcast %cst_16 : f32 to vector<1024x128xf32>
      %20 = arith.maximumf %18, %19 : vector<1024x128xf32>
      %c0_17 = arith.constant 0 : index
      %c0_18 = arith.constant 0 : index
      %21 = vector.load %arg7[%c0_17, %c0_18] : memref<1024x128xf32, #tpu.memory_space<vmem>>, vector<1024x128xf32>
      tpu.vector_store %arg7[%c0_17, %c0_18], %20 {strides = array<i32>} : memref<1024x128xf32, #tpu.memory_space<vmem>>, vector<1024x128xf32>,
    } else {
    }
    return
  }
  func.func @transform_0(%arg0: i32, %arg1: i32, %arg2: i32) -> (i32, i32) {
    %c0_i32 = arith.constant 0 : i32
    return %arg0, %arg2 : i32, i32
  }
  func.func @transform_1(%arg0: i32, %arg1: i32, %arg2: i32) -> (i32, i32) {
    %c0_i32 = arith.constant 0 : i32
    return %arg2, %arg1 : i32, i32
  }
  func.func @transform_2(%arg0: i32, %arg1: i32, %arg2: i32) -> (i32, i32) {
    %c0_i32 = arith.constant 0 : i32
    %c0_i32_0 = arith.constant 0 : i32
    return %c0_i32, %arg1 : i32, i32
  }
  func.func @transform_3(%arg0: i32, %arg1: i32, %arg2: i32) -> (i32, i32) {
    %c0_i32 = arith.constant 0 : i32
    %c0_i32_0 = arith.constant 0 : i32
    return %c0_i32, %arg1 : i32, i32
  }
  func.func @transform_4(%arg0: i32, %arg1: i32, %arg2: i32) -> (i32, i32) {
    %c0_i32 = arith.constant 0 : i32
    return %arg0, %arg1 : i32, i32
  }
}

</mosaic_0001>

<bundles_post_ra>
// kernel: tpu_custom_call.1
= control target key start
LH: loop header
LB: loop body
LE: loop exit
PB: predicated region body
PF: predicated region fallthrough
CT: control target
= control target key end

     0   :  { %s5119_s0 = inlined_call_operand.hbm [shape: bf16[14336,256], index: 0, kind: input, shape index: {}]   ;;  %s5120_s1 = inlined_call_operand.hbm [shape: bf16[256,128], index: 1, kind: input, shape index: {}]   ;;  %s5121_s2 = inlined_call_operand.hbm [shape: f32[1,128], index: 2, kind: input, shape index: {}]   ;;  %s5122_s3 = inlined_call_operand.hbm [shape: f32[1,128], index: 3, kind: input, shape index: {}]   ;;  %s5123_s4 = inlined_call_operand.hbm [shape: f32[14336,128], index: 4, kind: output, shape index: {}]  }
   0x1   :  { %5124 = sst [smem:[#allocation16_spill]] %s5120_s1 }
   0x2   :  { %5125 = sst [smem:[#allocation17_spill]] %s5121_s2 }
   0x3   :  { %9 = vsyncpa [#allocation4], 0 }
   0x4   :  { %11 = vsyncpa [#allocation4 + $0x1], 0 }
   0x5   :  { %12 = vsyncpa [#allocation7], 0 }
   0x6   :  { %13 = vsyncpa [#allocation10], 0 }
   0x7   :  { %14 = vsyncpa [#allocation5], 0 }
   0x8   :  { %16 = vsyncpa [#allocation5 + $0x1], 0  ;;  %s4291_s15 = smov 0   ;;  %s4293_s16 = smov 0  }
   0x9   :  { %s4295_s17 = smov 0   ;;  %s4297_s18 = smov 0  }
   0xa   :  { %s4299_s19 = smov 0   ;;  %s4301_s20 = smov 0  }
   0xb LB: > { %s3179_s21 = sadd.s32 4294967295, %s4255_s20   ;;  %s3180_s22 = sadd.s32 4294967294, %s4255_s20   ;;  %s4255_s20 = sphi %s4301_s20, %s22_s20   ;;  %s4251_s19 = sphi %s4299_s19, %s5140_s19   ;;  %s4247_s18 = sphi %s4297_s18, %s5139_s18   ;;  %s4243_s17 = sphi %s4295_s17, %s5138_s17   ;;  %s4239_s16 = sphi %s4293_s16, %s5137_s16   ;;  %s4235_s15 = sphi %s4291_s15, %s5136_s15  }
   0xc   : > { %p63_p0 = scmp.ne.s32.totalorder %s4239_s16, %s4235_s15  ;;  %p4325_p1 = scmp.eq.s32.totalorder %s3179_s21, 0 }
   0xd   : > { %p4329_p2 = scmp.eq.s32.totalorder %s3179_s21, 13  ;;  %p175_p3 = scmp.eq.s32.totalorder %s3180_s22, 13 }
   0xe   : > { %p4335_p4 = por %p4325_p1, %p63_p0  ;;  %p3181_p5 = scmp.ge.s32.totalorder %s4255_s20, 1 }
   0xf   : > { %p4340_p6 = por %p175_p3, %p63_p0  ;;  %p182_p7 = scmp.lt.s32.totalorder %s4255_s20, 15 }
  0x10   : > { %s5130_s1 = sld [smem:[#allocation16_spill]]  ;;  %s4257_s5 = smov [#allocation6]  }
  0x11   : > { %p4348_p8 = pnand %p3181_p5, %p182_p7  ;;  %s199_s6 = sshll.u32 %s4257_s5, 4  ;;  %s200_s6 = int_to_ptr.vmem [resolvable:$true] %s199_s6 }
  0x12   : > { %s5133_s2 = sld [smem:[#allocation17_spill]]  ;;  %s4258_s11 = smov 64  }
  0x13   : > { %p3956_p9 = pneg %p4348_p8  ;;  %s4259_s12 = smov 4  }
  0x14   : > { %s4260_s13 = smov [#allocation8]   ;;  %s226_s27 = sshll.u32 %s5122_s3, 4  ;;  %s227_s27 = int_to_ptr.hbm [resolvable:$true] %s226_s27 }
  0x15   : > { %p4356_p10 = pnand %p3956_p9, %p4325_p1  ;;  %s215_s14 = sshll.u32 %s4260_s13, 4  ;;  %s216_s14 = int_to_ptr.vmem [resolvable:$true] %s215_s14 }
  0x16   : > { %s197_s29 = sshll.u32 %s5130_s1, 4  ;;  %s4261_s28 = smov [#allocation9]   ;;  %s198_s29 = int_to_ptr.hbm [resolvable:$true] %s197_s29 }
  0x17   : > { %3959 = dma.hbm_to_vmem [thread:$0]  (!%p4356_p10), %s198_s29, 2048, %s200_s6, [#allocation7], %s4258_s11, %s4258_s11, %s4259_s12  }
  0x18   : > { %s213_s10 = sshll.u32 %s5133_s2, 4  ;;  %s228_s5 = sshll.u32 %s4261_s28, 4  ;;  %s214_s10 = int_to_ptr.hbm [resolvable:$true] %s213_s10  ;;  %s229_s5 = int_to_ptr.vmem [resolvable:$true] %s228_s5 }
  0x19   : > { %3962 = dma.hbm_to_vmem [thread:$0]  (!%p4356_p10), %s214_s10, 16, %s216_s14, [#allocation7]  }
  0x1a   : > { %3965 = dma.hbm_to_vmem [thread:$0]  (!%p4356_p10), %s227_s27, 16, %s229_s5, [#allocation10]  }
  0x1b   : > { %s41_s29 = sadd.s32 1, %s4251_s19  ;;  %s50_s6 = sadd.s32 1, %s4243_s17 }
  0x1c   : > { %p43_p11 = scmp.ge.s32.totalorder %s41_s29, 14  ;;  %p57_p12 = scmp.ne.s32.totalorder %s4243_s17, %s4239_s16 }
  0x1d   : > { %p58_p13 = scmp.eq.s32.totalorder %s4255_s20, 0  ;;  %p3977_p5 = scmp.lt.s32.totalorder %s4255_s20, 14 }
  0x1e   : > { %s5142_s29 = smov (%p43_p11, %s41_s29), 0  ;;  %p4385_p3 = por %p4329_p2, %p57_p12 }
  0x1f   : > { %p4379_p0 = por %p58_p13, %p57_p12  ;;  %s45_s7 = ssub.s32 %s4251_s19, %s5142_s29 }
  0x20   : > { %p48_p7 = scmp.eq.s32.totalorder %s45_s7, 0  ;;  %s239_s10 = sand.u32 1, %s4243_s17  }
  0x21   : > { %s3186_s11 = sshll.u32 %s239_s10, 10  ;;  %s3778_s13 = sshll.u32 %s4251_s19, 10 }
  0x22   : > { %s4394_s12 = scalar_select %p48_p7, %s4243_s17, %s50_s6  }
  0x23   : > { %s251_s22 = scalar_lea.hbm %s5119_s0, %s3778_s13  ;;  %s243_s27 = scalar_lea.vmem [#allocation3], %s3186_s11 }
  0x24   : > { %s254_s28 = sshll.u32 %s243_s27, 4  ;;  %s252_s24 = sshll.u32 %s251_s22, 4  ;;  %s255_s28 = int_to_ptr.vmem [resolvable:$true] %s254_s28  ;;  %s253_s24 = int_to_ptr.hbm [resolvable:$true] %s252_s24 }
  0x25   : > { %p3967_p2 = pnand %p3977_p5, %p4379_p0  ;;  %s240_s5 = scalar_lea.sflag [#allocation4], %s239_s10 }
  0x26   : > { %s4262_s1 = smov 128   ;;  %s4263_s2 = smov 8  }
  0x27   : > { %3969 = dma.hbm_to_vmem [thread:$0]  (!%p3967_p2), %s253_s24, 16384, %s255_s28, %s240_s5, %s4262_s1, %s4262_s1, %s4263_s2  }
  0x28   : > { %266 = sbr.rel (%p4348_p8) target bundleno = 731 (0x2db), region = 36  ;;  %s4405_s6 = sand.u32 (!%p4348_p8), 1, %s4239_s16  }
  0x29   : > { %s3191_s7 = sshll.u32 (!%p4348_p8), %s4405_s6, 10  ;;  %s269_s11 = scalar_lea.sflag (!%p4348_p8), [#allocation4], %s4405_s6 }
  0x2a   : > { %s4411_s13 = scalar_lea.vmem (!%p4348_p8), [#allocation3], %s3191_s7 }
  0x2d   : > { %4218 = dma.done.wait (%p4335_p4), %s269_s11, 16384  }
  0x2e   : > { %4220 = vsyncadd (%p4335_p4), %s269_s11, 4294950912 }
  0x2f   : > { %4222 = dma.done.wait (%p4325_p1), [#allocation7], 2064  }
  0x30   : > { %4224 = vsyncadd (%p4325_p1), [#allocation7], 4294965232 }
  0x31   : > { %4226 = dma.done.wait (%p4325_p1), [#allocation10], 16  }
  0x32   : > { %4228 = vsyncadd (%p4325_p1), [#allocation10], 4294967280  ;;  %v3914_v0 = vld [vmem:[#allocation6 + $0x38] sm:$0xff]  ;;  %v3913_v2 = vld [vmem:[#allocation6 + $0x30] sm:$0xff]  ;;  %s4505_s1 = scalar_lea.vmem [#allocation11], %s3191_s7  ;;  %s3923_s2 = sshll.u32 %s4247_s18, 10 }
  0x33   : > { %v3922_v1 = vld [vmem:[#allocation6 + $0x78] sm:$0xff]  ;;  %1473 = vmatpush.bf16.msra.mxu0 %v3914_v0  ;;  %3924 = vmatpush.bf16.msra.mxu2 %v3914_v0  ;;  %v3921_v3 = vld [vmem:[#allocation6 + $0x70] sm:$0xff]  ;;  %v3912_v4 = vld [vmem:[#allocation6 + $0x28] sm:$0xff]  ;;  %s3051_s30 = scalar_lea.hbm %s5123_s4, %s3923_s2  ;;  %s3052_s8 = sshll.u32 %s4505_s1, 4  ;;  %s3053_s8 = int_to_ptr.vmem [resolvable:$true] %s3052_s8 }
  0x34   : > { %1802 = vmatpush.bf16.msra.mxu1 %v3922_v1  ;;  %3932 = vmatpush.bf16.msra.mxu3 %v3922_v1  ;;  %v3920_v5 = vld [vmem:[#allocation6 + $0x68] sm:$0xff]  ;;  %v3911_v6 = vld [vmem:[#allocation6 + $0x20] sm:$0xff]  ;;  %v3910_v8 = vld [vmem:[#allocation6 + $0x18] sm:$0xff]  ;;  %s3054_s18 = sshll.u32 %s3051_s30, 4  ;;  %s3039_s10 = scalar_lea.sflag [#allocation5], %s4405_s6  ;;  %s3055_s18 = int_to_ptr.hbm [resolvable:$true] %s3054_s18 }
  0x35   : > { %v3919_v7 = vld [vmem:[#allocation6 + $0x60] sm:$0xff]  ;;  %v3918_v9 = vld [vmem:[#allocation6 + $0x58] sm:$0xff]  ;;  %v3909_v10 = vld [vmem:[#allocation6 + $0x10] sm:$0xff]  ;;  %s4179_s14 = sshra.s32 %s3055_s18, 4  ;;  %s4185_s28 = scalar_lea.hbm %s5123_s4, 14336  ;;  %s4180_s14 = int_to_ptr.hbm [resolvable:$true] %s4179_s14 }
  0x36   : > { %v3917_v11 = vld [vmem:[#allocation6 + $0x50] sm:$0xff]  ;;  %v3908_v12 = vld [vmem:[#allocation6 + $0x8] sm:$0xff]  ;;  %v3907_v14 = vld [vmem:[#allocation6] sm:$0xff]  ;;  %s4181_s21 = scalar_lea.hbm %s4180_s14, 1024  ;;  %p4186_p9 = scmp.lt.s32.totalorder %s4180_s14, %s5123_s4 }
  0x37   : > { %1474 = vmatpush.bf16.msra.mxu0 %v3913_v2  ;;  %3925 = vmatpush.bf16.msra.mxu2 %v3913_v2  ;;  %v3916_v13 = vld [vmem:[#allocation6 + $0x48] sm:$0xff]  ;;  %v3915_v15 = vld [vmem:[#allocation6 + $0x40] sm:$0xff]  ;;  %v3206_v28 = vld [vmem:[%s4411_s13 + $0x10] sm:$0xf]  ;;  %p4182_p1 = scmp.ne.s32.totalorder %s4180_s14, %s4181_s21  ;;  %p4187_p10 = scmp.lt.s32.totalorder %s4185_s28, %s4181_s21 }
  0x38   : > { %1803 = vmatpush.bf16.msra.mxu1 %v3921_v3  ;;  %3933 = vmatpush.bf16.msra.mxu3 %v3921_v3  ;;  %v3198_v16 = vld [vmem:[%s4411_s13] sm:$0xf]  ;;  %v3780_v17 = vld [vmem:[%s4411_s13 + $0x4] sm:$0xf0]  ;;  %v3779_v20 = vld [vmem:[%s4411_s13 + $0x4] sm:$0xf] }
  0x39   : > { %v3454_v18 = vld [vmem:[%s4411_s13 + $0x200] sm:$0xf]  ;;  %v3844_v19 = vld [vmem:[%s4411_s13 + $0x204] sm:$0xf0]  ;;  %v3200_v21 = vld [vmem:[%s4411_s13 + $0x8] sm:$0xf0]  ;;  %v3199_v24 = vor.u32 %v3780_v17, %v3198_v16  ;;  %p4183_p4 = pnand %p4182_p1, %p4385_p3  ;;  %p4188_p11 = por %p4187_p10, %p4186_p9 }
  0x3a   : > { %v3843_v22 = vld [vmem:[%s4411_s13 + $0x204] sm:$0xf]  ;;  %v3456_v23 = vld [vmem:[%s4411_s13 + $0x208] sm:$0xf0]  ;;  %v3455_v25 = vor.u32 %v3844_v19, %v3454_v18  ;;  %v3203_v26 = vor.u32 %v3779_v20, %v3200_v21  ;;  %v3782_v29 = vld [vmem:[%s4411_s13 + $0x14] sm:$0xf0] }
  0x3b   : > { %1475 = vmatpush.bf16.msra.mxu0 %v3912_v4  ;;  %3926 = vmatpush.bf16.msra.mxu2 %v3912_v4  ;;  %v3459_v27 = vor.u32 %v3843_v22, %v3456_v23  ;;  %v3462_v30 = vld [vmem:[%s4411_s13 + $0x210] sm:$0xf]  ;;  %v3846_v31 = vld [vmem:[%s4411_s13 + $0x214] sm:$0xf0]  ;;  %v3781_v32 = vld [vmem:[%s4411_s13 + $0x14] sm:$0xf]  ;;  %v3207_v36 = vor.u32 %v3782_v29, %v3206_v28  ;;  %p4184_p8 = pneg %p4183_p4 }
  0x3c   : > { %1804 = vmatpush.bf16.msra.mxu1 %v3920_v5  ;;  %3934 = vmatpush.bf16.msra.mxu3 %v3920_v5  ;;  %v3208_v33 = vld [vmem:[%s4411_s13 + $0x18] sm:$0xf0]  ;;  %v3845_v34 = vld [vmem:[%s4411_s13 + $0x214] sm:$0xf]  ;;  %v3463_v37 = vor.u32 %v3846_v31, %v3462_v30  ;;  %v3214_v40 = vld [vmem:[%s4411_s13 + $0x20] sm:$0xf] }
  0x3d   : > { %v3464_v35 = vld [vmem:[%s4411_s13 + $0x218] sm:$0xf0]  ;;  %v3211_v38 = vor.u32 %v3781_v32, %v3208_v33  ;;  %v3784_v41 = vld [vmem:[%s4411_s13 + $0x24] sm:$0xf0]  ;;  %v3470_v42 = vld [vmem:[%s4411_s13 + $0x220] sm:$0xf]  ;;  %p4189_p12 = pnand %p4188_p11, %p4184_p8 }
  0x3e   : > { %v3467_v39 = vor.u32 %v3845_v34, %v3464_v35  ;;  %v3848_v43 = vld [vmem:[%s4411_s13 + $0x224] sm:$0xf0]  ;;  %v3783_v44 = vld [vmem:[%s4411_s13 + $0x24] sm:$0xf]  ;;  %v3216_v45 = vld [vmem:[%s4411_s13 + $0x28] sm:$0xf0]  ;;  %v3215_v48 = vor.u32 %v3784_v41, %v3214_v40 }
  0x3f   : > { %1476 = vmatpush.bf16.msra.mxu0 %v3911_v6  ;;  %3927 = vmatpush.bf16.msra.mxu2 %v3911_v6  ;;  %v3847_v46 = vld [vmem:[%s4411_s13 + $0x224] sm:$0xf]  ;;  %v3472_v47 = vld [vmem:[%s4411_s13 + $0x228] sm:$0xf0]  ;;  %v3471_v49 = vor.u32 %v3848_v43, %v3470_v42  ;;  %v3219_v50 = vor.u32 %v3783_v44, %v3216_v45  ;;  %v3222_v52 = vld [vmem:[%s4411_s13 + $0x30] sm:$0xf] }
  0x40   : > { %1805 = vmatpush.bf16.msra.mxu1 %v3919_v7  ;;  %3935 = vmatpush.bf16.msra.mxu3 %v3919_v7  ;;  %v3475_v51 = vor.u32 %v3847_v46, %v3472_v47  ;;  %v3786_v53 = vld [vmem:[%s4411_s13 + $0x34] sm:$0xf0]  ;;  %v3478_v54 = vld [vmem:[%s4411_s13 + $0x230] sm:$0xf]  ;;  %v3785_v56 = vld [vmem:[%s4411_s13 + $0x34] sm:$0xf] }
  0x41   : > { %v3850_v55 = vld [vmem:[%s4411_s13 + $0x234] sm:$0xf0]  ;;  %v3224_v57 = vld [vmem:[%s4411_s13 + $0x38] sm:$0xf0]  ;;  %v3849_v58 = vld [vmem:[%s4411_s13 + $0x234] sm:$0xf]  ;;  %v3223_v60 = vor.u32 %v3786_v53, %v3222_v52 }
  0x42   : > { %v3480_v59 = vld [vmem:[%s4411_s13 + $0x238] sm:$0xf0]  ;;  %v3479_v61 = vor.u32 %v3850_v55, %v3478_v54  ;;  %v3227_v62 = vor.u32 %v3785_v56, %v3224_v57  ;;  %v3230_v0 = vld [vmem:[%s4411_s13 + $0x40] sm:$0xf]  ;;  %v3788_v1 = vld [vmem:[%s4411_s13 + $0x44] sm:$0xf0] }
  0x43   : > { %1477 = vmatpush.bf16.msra.mxu0 %v3910_v8  ;;  %3928 = vmatpush.bf16.msra.mxu2 %v3910_v8  ;;  %v3483_v63 = vor.u32 %v3849_v58, %v3480_v59  ;;  %v3486_v2 = vld [vmem:[%s4411_s13 + $0x240] sm:$0xf]  ;;  %v3852_v3 = vld [vmem:[%s4411_s13 + $0x244] sm:$0xf0]  ;;  %v3787_v4 = vld [vmem:[%s4411_s13 + $0x44] sm:$0xf]  ;;  %v3231_v8 = vor.u32 %v3788_v1, %v3230_v0 }
  0x44   : > { %1806 = vmatpush.bf16.msra.mxu1 %v3918_v9  ;;  %3936 = vmatpush.bf16.msra.mxu3 %v3918_v9  ;;  %v3232_v5 = vld [vmem:[%s4411_s13 + $0x48] sm:$0xf0]  ;;  %v3851_v6 = vld [vmem:[%s4411_s13 + $0x244] sm:$0xf]  ;;  %v3487_v9 = vor.u32 %v3852_v3, %v3486_v2  ;;  %v3789_v16 = vld [vmem:[%s4411_s13 + $0x54] sm:$0xf] }
  0x45   : > { %v3488_v7 = vld [vmem:[%s4411_s13 + $0x248] sm:$0xf0]  ;;  %v3240_v17 = vld [vmem:[%s4411_s13 + $0x58] sm:$0xf0]  ;;  %v3853_v18 = vld [vmem:[%s4411_s13 + $0x254] sm:$0xf] }
  0x46   : > { %v3496_v19 = vld [vmem:[%s4411_s13 + $0x258] sm:$0xf0]  ;;  %v3243_v22 = vor.u32 %v3789_v16, %v3240_v17  ;;  %v3791_v28 = vld [vmem:[%s4411_s13 + $0x64] sm:$0xf]  ;;  %v3248_v29 = vld [vmem:[%s4411_s13 + $0x68] sm:$0xf0] }
  0x47   : > { %1478 = vmatpush.bf16.msra.mxu0 %v3909_v10  ;;  %3929 = vmatpush.bf16.msra.mxu2 %v3909_v10  ;;  %v3235_v10 = vor.u32 %v3787_v4, %v3232_v5  ;;  %v3499_v23 = vor.u32 %v3853_v18, %v3496_v19  ;;  %v3855_v30 = vld [vmem:[%s4411_s13 + $0x264] sm:$0xf]  ;;  %v3504_v31 = vld [vmem:[%s4411_s13 + $0x268] sm:$0xf0]  ;;  %v3251_v34 = vor.u32 %v3791_v28, %v3248_v29  ;;  %v3793_v40 = vld [vmem:[%s4411_s13 + $0x74] sm:$0xf] }
  0x48   : > { %1807 = vmatpush.bf16.msra.mxu1 %v3917_v11  ;;  %3937 = vmatpush.bf16.msra.mxu3 %v3917_v11  ;;  %v3491_v11 = vor.u32 %v3851_v6, %v3488_v7  ;;  %v3507_v35 = vor.u32 %v3855_v30, %v3504_v31  ;;  %v3256_v41 = vld [vmem:[%s4411_s13 + $0x78] sm:$0xf0]  ;;  %v3857_v42 = vld [vmem:[%s4411_s13 + $0x274] sm:$0xf]  ;;  %v3795_v52 = vld [vmem:[%s4411_s13 + $0x84] sm:$0xf] }
  0x49   : > { %v3512_v43 = vld [vmem:[%s4411_s13 + $0x278] sm:$0xf0]  ;;  %v3259_v46 = vor.u32 %v3793_v40, %v3256_v41  ;;  %v3264_v53 = vld [vmem:[%s4411_s13 + $0x88] sm:$0xf0]  ;;  %v3859_v54 = vld [vmem:[%s4411_s13 + $0x284] sm:$0xf] }
  0x4a   : > { %v3515_v47 = vor.u32 %v3857_v42, %v3512_v43  ;;  %v3520_v55 = vld [vmem:[%s4411_s13 + $0x288] sm:$0xf0]  ;;  %v4497_v59 = vld [vmem:[#allocation8] ss:$0 sm:$0xff]  ;;  %v4499_v0 = vld [vmem:[#allocation9] ss:$0 sm:$0xff] }
  0x4b   : > { %1479 = vmatpush.bf16.msra.mxu0 %v3908_v12  ;;  %3930 = vmatpush.bf16.msra.mxu2 %v3908_v12  ;;  %v3238_v12 = vld [vmem:[%s4411_s13 + $0x50] sm:$0xf]  ;;  %v3862_v16 = vld [vmem:[%s4411_s13 + $0x294] sm:$0xf0]  ;;  %v3797_v17 = vld [vmem:[%s4411_s13 + $0x94] sm:$0xf] }
  0x4c   : > { %1808 = vmatpush.bf16.msra.mxu1 %v3916_v13  ;;  %3938 = vmatpush.bf16.msra.mxu3 %v3916_v13  ;;  %v3790_v13 = vld [vmem:[%s4411_s13 + $0x54] sm:$0xf0]  ;;  %v3272_v18 = vld [vmem:[%s4411_s13 + $0x98] sm:$0xf0]  ;;  %v3861_v19 = vld [vmem:[%s4411_s13 + $0x294] sm:$0xf] }
  0x4d   : > { %v3239_v20 = vor.u32 %v3790_v13, %v3238_v12  ;;  %v3798_v12 = vld [vmem:[%s4411_s13 + $0x94] sm:$0xf0]  ;;  %v3275_v30 = vor.u32 %v3797_v17, %v3272_v18 }
  0x4f   : > { %1480 = vmatpush.bf16.msra.mxu0 %v3907_v14  ;;  %3931 = vmatpush.bf16.msra.mxu2 %v3907_v14  ;;  %v3494_v14 = vld [vmem:[%s4411_s13 + $0x250] sm:$0xf] }
  0x50   : > { %1809 = vmatpush.bf16.msra.mxu1 %v3915_v15  ;;  %3939 = vmatpush.bf16.msra.mxu3 %v3915_v15  ;;  %v3854_v15 = vld [vmem:[%s4411_s13 + $0x254] sm:$0xf0] }
  0x51   : > { %v3495_v21 = vor.u32 %v3854_v15, %v3494_v14  ;;  %v3526_v15 = vld [vmem:[%s4411_s13 + $0x290] sm:$0xf] }
  0x52   : > { %1481 = vmatmul.bf16.vlgmr.msra.gmra.mxu0 %v3199_v24  ;;  %1641 = vmatmul.bf16.vlgmr.msra.gmra.mxu2 %v3455_v25  ;;  %v3246_v24 = vld [vmem:[%s4411_s13 + $0x60] sm:$0xf]  ;;  %v3792_v25 = vld [vmem:[%s4411_s13 + $0x64] sm:$0xf0] }
  0x53   : > { %1810 = vmatmul.bf16.vlgmr.msra.gmra.mxu1 %v3203_v26  ;;  %1970 = vmatmul.bf16.vlgmr.msra.gmra.mxu3 %v3459_v27  ;;  %v3502_v26 = vld [vmem:[%s4411_s13 + $0x260] sm:$0xf]  ;;  %v3856_v27 = vld [vmem:[%s4411_s13 + $0x264] sm:$0xf0]  ;;  %v3247_v32 = vor.u32 %v3792_v25, %v3246_v24 }
  0x54   : > { %v3503_v33 = vor.u32 %v3856_v27, %v3502_v26  ;;  %v3527_v26 = vor.u32 %v3862_v16, %v3526_v15 }
  0x62   : > { %1486 = vmatmul.bf16.gmra.mxu0 %v3207_v36  ;;  %1646 = vmatmul.bf16.gmra.mxu2 %v3463_v37  ;;  %v3254_v36 = vld [vmem:[%s4411_s13 + $0x70] sm:$0xf]  ;;  %v3794_v37 = vld [vmem:[%s4411_s13 + $0x74] sm:$0xf0] }
  0x63   : > { %1815 = vmatmul.bf16.gmra.mxu1 %v3211_v38  ;;  %1975 = vmatmul.bf16.gmra.mxu3 %v3467_v39  ;;  %v3510_v38 = vld [vmem:[%s4411_s13 + $0x270] sm:$0xf]  ;;  %v3858_v39 = vld [vmem:[%s4411_s13 + $0x274] sm:$0xf0]  ;;  %v3255_v44 = vor.u32 %v3794_v37, %v3254_v36 }
  0x64   : > { %v3511_v45 = vor.u32 %v3858_v39, %v3510_v38 }
  0x72   : > { %1491 = vmatmul.bf16.gmra.mxu0 %v3215_v48  ;;  %1651 = vmatmul.bf16.gmra.mxu2 %v3471_v49  ;;  %v3262_v48 = vld [vmem:[%s4411_s13 + $0x80] sm:$0xf]  ;;  %v3796_v49 = vld [vmem:[%s4411_s13 + $0x84] sm:$0xf0] }
  0x73   : > { %1820 = vmatmul.bf16.gmra.mxu1 %v3219_v50  ;;  %1980 = vmatmul.bf16.gmra.mxu3 %v3475_v51  ;;  %v3518_v50 = vld [vmem:[%s4411_s13 + $0x280] sm:$0xf]  ;;  %v3860_v51 = vld [vmem:[%s4411_s13 + $0x284] sm:$0xf0]  ;;  %v3263_v56 = vor.u32 %v3796_v49, %v3262_v48 }
  0x74   : > { %v3519_v57 = vor.u32 %v3860_v51, %v3518_v50  ;;  %v3800_v48 = vld [vmem:[%s4411_s13 + $0xa4] sm:$0xf0]  ;;  %v3534_v51 = vld [vmem:[%s4411_s13 + $0x2a0] sm:$0xf] }
  0x82   : > { %1496 = vmatmul.bf16.gmra.mxu0 %v3223_v60  ;;  %1656 = vmatmul.bf16.gmra.mxu2 %v3479_v61  ;;  %v3267_v60 = vor.u32 %v3795_v52, %v3264_v53  ;;  %v3523_v61 = vor.u32 %v3859_v54, %v3520_v55  ;;  %v3864_v52 = vld [vmem:[%s4411_s13 + $0x2a4] sm:$0xf0]  ;;  %v3799_v53 = vld [vmem:[%s4411_s13 + $0xa4] sm:$0xf]  ;;  %v3280_v54 = vld [vmem:[%s4411_s13 + $0xa8] sm:$0xf0] }
  0x83   : > { %1825 = vmatmul.bf16.gmra.mxu1 %v3227_v62  ;;  %1985 = vmatmul.bf16.gmra.mxu3 %v3483_v63  ;;  %v3863_v55 = vld [vmem:[%s4411_s13 + $0x2a4] sm:$0xf] }
  0x92   : > { %1501 = vmatmul.bf16.gmra.mxu0 %v3231_v8  ;;  %1661 = vmatmul.bf16.gmra.mxu2 %v3487_v9 }
  0x93   : > { %1830 = vmatmul.bf16.gmra.mxu1 %v3235_v10  ;;  %1990 = vmatmul.bf16.gmra.mxu3 %v3491_v11  ;;  %v3270_v11 = vld [vmem:[%s4411_s13 + $0x90] sm:$0xf] }
  0x94   : > { %v3271_v25 = vor.u32 %v3798_v12, %v3270_v11 }
  0xa2   : > { %1506 = vmatmul.bf16.gmra.mxu0 %v3239_v20  ;;  %1666 = vmatmul.bf16.gmra.mxu2 %v3495_v21  ;;  %v3528_v20 = vld [vmem:[%s4411_s13 + $0x298] sm:$0xf0] }
  0xa3   : > { %1835 = vmatmul.bf16.gmra.mxu1 %v3243_v22  ;;  %1995 = vmatmul.bf16.gmra.mxu3 %v3499_v23  ;;  %v3531_v31 = vor.u32 %v3861_v19, %v3528_v20 }
  0xb2   : > { %1511 = vmatmul.bf16.gmra.mxu0 %v3247_v32  ;;  %1671 = vmatmul.bf16.gmra.mxu2 %v3503_v33 }
  0xb3   : > { %1840 = vmatmul.bf16.gmra.mxu1 %v3251_v34  ;;  %2000 = vmatmul.bf16.gmra.mxu3 %v3507_v35 }
  0xc2   : > { %1516 = vmatmul.bf16.gmra.mxu0 %v3255_v44  ;;  %1676 = vmatmul.bf16.gmra.mxu2 %v3511_v45 }
  0xc3   : > { %1845 = vmatmul.bf16.gmra.mxu1 %v3259_v46  ;;  %2005 = vmatmul.bf16.gmra.mxu3 %v3515_v47  ;;  %v3278_v47 = vld [vmem:[%s4411_s13 + $0xa0] sm:$0xf] }
  0xcf   : > { %v1482_v58 = vpop.f32.mrf.mxu0 }
  0xd0   : > { %v1811_v62 = vpop.f32.mrf.mxu1 }
  0xd1   : > { %v1812_v63 = vadd.f32 %v1811_v62, %v1482_v58  ;;  %v3279_v62 = vor.u32 %v3800_v48, %v3278_v47 }
  0xd2   : > { %1521 = vmatmul.bf16.gmra.mxu0 %v3263_v56  ;;  %1681 = vmatmul.bf16.gmra.mxu2 %v3519_v57  ;;  %v3536_v56 = vld [vmem:[%s4411_s13 + $0x2a8] sm:$0xf0] }
  0xd3   : > { %v2522_v1 = vmul.f32 %v4497_v59, %v1812_v63  ;;  %1850 = vmatmul.bf16.gmra.mxu1 %v3267_v60  ;;  %2010 = vmatmul.bf16.gmra.mxu3 %v3523_v61  ;;  %v3535_v63 = vor.u32 %v3864_v52, %v3534_v51 }
  0xd5   : > { %v2654_v2 = vadd.f32 %v4499_v0, %v2522_v1  ;;  %v1642_v3 = vpop.f32.mrf.mxu2 }
  0xd6   : > { %v1971_v4 = vpop.f32.mrf.mxu3 }
  0xd7   : > { %v2782_v5 = vmax.f32 %v2654_v2, 0.0  ;;  %v1972_v6 = vadd.f32 %v1971_v4, %v1642_v3  ;;  %v1484_v7 = vpop.f32.mrf.mxu0  ;;  %v3283_v4 = vor.u32 %v3799_v53, %v3280_v54 }
  0xd8   : > { %v1813_v8 = vpop.f32.mrf.mxu1 }
  0xd9   : > { %2910 = vst [vmem:[%s4505_s1] sm:$0xff] %v2782_v5  ;;  %v2586_v9 = vmul.f32 %v4497_v59, %v1972_v6  ;;  %v1814_v10 = vadd.f32 %v1813_v8, %v1484_v7  ;;  %v3539_v5 = vor.u32 %v3863_v55, %v3536_v56 }
  0xdb   : > { %v2718_v13 = vadd.f32 %v4499_v0, %v2586_v9  ;;  %v2523_v14 = vmul.f32 %v4497_v59, %v1814_v10 }
  0xdd   : > { %v2846_v21 = vmax.f32 %v2718_v13, 0.0  ;;  %v2655_v22 = vadd.f32 %v4499_v0, %v2523_v14  ;;  %v1644_v23 = vpop.f32.mrf.mxu2 }
  0xde   : > { %v1973_v24 = vpop.f32.mrf.mxu3 }
  0xdf   : > { %2974 = vst [vmem:[%s4505_s1 + $0x200] sm:$0xff] %v2846_v21  ;;  %v2783_v27 = vmax.f32 %v2655_v22, 0.0  ;;  %v1974_v28 = vadd.f32 %v1973_v24, %v1644_v23  ;;  %v1487_v29 = vpop.f32.mrf.mxu0  ;;  %v3286_v21 = vld [vmem:[%s4411_s13 + $0xb0] sm:$0xf]  ;;  %v3802_v22 = vld [vmem:[%s4411_s13 + $0xb4] sm:$0xf0] }
  0xe0   : > { %v1816_v32 = vpop.f32.mrf.mxu1 }
  0xe1   : > { %2911 = vst [vmem:[%s4505_s1 + $0x8] sm:$0xff] %v2783_v27  ;;  %v2587_v33 = vmul.f32 %v4497_v59, %v1974_v28  ;;  %v1817_v34 = vadd.f32 %v1816_v32, %v1487_v29  ;;  %v3801_v27 = vld [vmem:[%s4411_s13 + $0xb4] sm:$0xf]  ;;  %v3288_v28 = vld [vmem:[%s4411_s13 + $0xb8] sm:$0xf0] }
  0xe2   : > { %1526 = vmatmul.bf16.gmra.mxu0 %v3271_v25  ;;  %1686 = vmatmul.bf16.gmra.mxu2 %v3527_v26  ;;  %v3542_v25 = vld [vmem:[%s4411_s13 + $0x2b0] sm:$0xf]  ;;  %v3866_v26 = vld [vmem:[%s4411_s13 + $0x2b4] sm:$0xf0]  ;;  %v3865_v29 = vld [vmem:[%s4411_s13 + $0x2b4] sm:$0xf] }
  0xe3   : > { %v2719_v35 = vadd.f32 %v4499_v0, %v2587_v33  ;;  %v2524_v36 = vmul.f32 %v4497_v59, %v1817_v34  ;;  %1855 = vmatmul.bf16.gmra.mxu1 %v3275_v30  ;;  %2015 = vmatmul.bf16.gmra.mxu3 %v3531_v31  ;;  %v3544_v30 = vld [vmem:[%s4411_s13 + $0x2b8] sm:$0xf0] }
  0xe5   : > { %v2847_v37 = vmax.f32 %v2719_v35, 0.0  ;;  %v2656_v38 = vadd.f32 %v4499_v0, %v2524_v36  ;;  %v1647_v39 = vpop.f32.mrf.mxu2  ;;  %v3287_v35 = vor.u32 %v3802_v22, %v3286_v21  ;;  %v3543_v36 = vor.u32 %v3866_v26, %v3542_v25 }
  0xe6   : > { %v1976_v40 = vpop.f32.mrf.mxu3 }
  0xe7   : > { %2975 = vst [vmem:[%s4505_s1 + $0x208] sm:$0xff] %v2847_v37  ;;  %v2784_v41 = vmax.f32 %v2656_v38, 0.0  ;;  %v1977_v42 = vadd.f32 %v1976_v40, %v1647_v39  ;;  %v1489_v43 = vpop.f32.mrf.mxu0  ;;  %v3291_v40 = vor.u32 %v3801_v27, %v3288_v28 }
  0xe8   : > { %v1818_v44 = vpop.f32.mrf.mxu1 }
  0xe9   : > { %2912 = vst [vmem:[%s4505_s1 + $0x10] sm:$0xff] %v2784_v41  ;;  %v2588_v45 = vmul.f32 %v4497_v59, %v1977_v42  ;;  %v1819_v46 = vadd.f32 %v1818_v44, %v1489_v43  ;;  %v3547_v41 = vor.u32 %v3865_v29, %v3544_v30 }
  0xeb   : > { %v2720_v49 = vadd.f32 %v4499_v0, %v2588_v45  ;;  %v2525_v50 = vmul.f32 %v4497_v59, %v1819_v46 }
  0xed   : > { %v2848_v57 = vmax.f32 %v2720_v49, 0.0  ;;  %v2657_v58 = vadd.f32 %v4499_v0, %v2525_v50  ;;  %v1649_v60 = vpop.f32.mrf.mxu2 }
  0xee   : > { %v1978_v61 = vpop.f32.mrf.mxu3 }
  0xef   : > { %2976 = vst [vmem:[%s4505_s1 + $0x210] sm:$0xff] %v2848_v57  ;;  %v2785_v1 = vmax.f32 %v2657_v58, 0.0  ;;  %v1979_v2 = vadd.f32 %v1978_v61, %v1649_v60  ;;  %v1492_v3 = vpop.f32.mrf.mxu0  ;;  %v3294_v57 = vld [vmem:[%s4411_s13 + $0xc0] sm:$0xf]  ;;  %v3804_v58 = vld [vmem:[%s4411_s13 + $0xc4] sm:$0xf0] }
  0xf0   : > { %v1821_v6 = vpop.f32.mrf.mxu1 }
  0xf1   : > { %2913 = vst [vmem:[%s4505_s1 + $0x18] sm:$0xff] %v2785_v1  ;;  %v2589_v7 = vmul.f32 %v4497_v59, %v1979_v2  ;;  %v1822_v8 = vadd.f32 %v1821_v6, %v1492_v3  ;;  %v3803_v1 = vld [vmem:[%s4411_s13 + $0xc4] sm:$0xf]  ;;  %v3296_v2 = vld [vmem:[%s4411_s13 + $0xc8] sm:$0xf0] }
  0xf2   : > { %1531 = vmatmul.bf16.gmra.mxu0 %v3279_v62  ;;  %1691 = vmatmul.bf16.gmra.mxu2 %v3535_v63  ;;  %v3550_v62 = vld [vmem:[%s4411_s13 + $0x2c0] sm:$0xf]  ;;  %v3868_v63 = vld [vmem:[%s4411_s13 + $0x2c4] sm:$0xf0]  ;;  %v3867_v3 = vld [vmem:[%s4411_s13 + $0x2c4] sm:$0xf] }
  0xf3   : > { %v2721_v9 = vadd.f32 %v4499_v0, %v2589_v7  ;;  %v2526_v10 = vmul.f32 %v4497_v59, %v1822_v8  ;;  %1860 = vmatmul.bf16.gmra.mxu1 %v3283_v4  ;;  %2020 = vmatmul.bf16.gmra.mxu3 %v3539_v5  ;;  %v3552_v4 = vld [vmem:[%s4411_s13 + $0x2c8] sm:$0xf0] }
  0xf5   : > { %v2849_v11 = vmax.f32 %v2721_v9, 0.0  ;;  %v2658_v12 = vadd.f32 %v4499_v0, %v2526_v10  ;;  %v1652_v13 = vpop.f32.mrf.mxu2  ;;  %v3295_v9 = vor.u32 %v3804_v58, %v3294_v57  ;;  %v3551_v10 = vor.u32 %v3868_v63, %v3550_v62 }
  0xf6   : > { %v1981_v14 = vpop.f32.mrf.mxu3 }
  0xf7   : > { %2977 = vst [vmem:[%s4505_s1 + $0x218] sm:$0xff] %v2849_v11  ;;  %v2786_v15 = vmax.f32 %v2658_v12, 0.0  ;;  %v1982_v16 = vadd.f32 %v1981_v14, %v1652_v13  ;;  %v1494_v17 = vpop.f32.mrf.mxu0  ;;  %v3299_v14 = vor.u32 %v3803_v1, %v3296_v2 }
  0xf8   : > { %v1823_v18 = vpop.f32.mrf.mxu1 }
  0xf9   : > { %2914 = vst [vmem:[%s4505_s1 + $0x20] sm:$0xff] %v2786_v15  ;;  %v2590_v19 = vmul.f32 %v4497_v59, %v1982_v16  ;;  %v1824_v20 = vadd.f32 %v1823_v18, %v1494_v17  ;;  %v3555_v15 = vor.u32 %v3867_v3, %v3552_v4 }
  0xfb   : > { %v2722_v23 = vadd.f32 %v4499_v0, %v2590_v19  ;;  %v2527_v24 = vmul.f32 %v4497_v59, %v1824_v20 }
  0xfd   : > { %v2850_v31 = vmax.f32 %v2722_v23, 0.0  ;;  %v2659_v32 = vadd.f32 %v4499_v0, %v2527_v24  ;;  %v1654_v33 = vpop.f32.mrf.mxu2 }
  0xfe   : > { %v1983_v34 = vpop.f32.mrf.mxu3 }
  0xff   : > { %2978 = vst [vmem:[%s4505_s1 + $0x220] sm:$0xff] %v2850_v31  ;;  %v2787_v37 = vmax.f32 %v2659_v32, 0.0  ;;  %v1984_v38 = vadd.f32 %v1983_v34, %v1654_v33  ;;  %v1497_v39 = vpop.f32.mrf.mxu0  ;;  %v3302_v31 = vld [vmem:[%s4411_s13 + $0xd0] sm:$0xf]  ;;  %v3806_v32 = vld [vmem:[%s4411_s13 + $0xd4] sm:$0xf0] }
 0x100   : > { %v1826_v42 = vpop.f32.mrf.mxu1 }
 0x101   : > { %2915 = vst [vmem:[%s4505_s1 + $0x28] sm:$0xff] %v2787_v37  ;;  %v2591_v43 = vmul.f32 %v4497_v59, %v1984_v38  ;;  %v1827_v44 = vadd.f32 %v1826_v42, %v1497_v39  ;;  %v3805_v37 = vld [vmem:[%s4411_s13 + $0xd4] sm:$0xf]  ;;  %v3304_v38 = vld [vmem:[%s4411_s13 + $0xd8] sm:$0xf0] }
 0x102   : > { %1536 = vmatmul.bf16.gmra.mxu0 %v3287_v35  ;;  %1696 = vmatmul.bf16.gmra.mxu2 %v3543_v36  ;;  %v3558_v35 = vld [vmem:[%s4411_s13 + $0x2d0] sm:$0xf]  ;;  %v3870_v36 = vld [vmem:[%s4411_s13 + $0x2d4] sm:$0xf0]  ;;  %v3869_v39 = vld [vmem:[%s4411_s13 + $0x2d4] sm:$0xf] }
 0x103   : > { %v2723_v45 = vadd.f32 %v4499_v0, %v2591_v43  ;;  %v2528_v46 = vmul.f32 %v4497_v59, %v1827_v44  ;;  %1865 = vmatmul.bf16.gmra.mxu1 %v3291_v40  ;;  %2025 = vmatmul.bf16.gmra.mxu3 %v3547_v41  ;;  %v3560_v40 = vld [vmem:[%s4411_s13 + $0x2d8] sm:$0xf0] }
 0x105   : > { %v2851_v47 = vmax.f32 %v2723_v45, 0.0  ;;  %v2660_v48 = vadd.f32 %v4499_v0, %v2528_v46  ;;  %v1657_v49 = vpop.f32.mrf.mxu2  ;;  %v3303_v45 = vor.u32 %v3806_v32, %v3302_v31  ;;  %v3559_v46 = vor.u32 %v3870_v36, %v3558_v35 }
 0x106   : > { %v1986_v50 = vpop.f32.mrf.mxu3 }
 0x107   : > { %2979 = vst [vmem:[%s4505_s1 + $0x228] sm:$0xff] %v2851_v47  ;;  %v2788_v51 = vmax.f32 %v2660_v48, 0.0  ;;  %v1987_v52 = vadd.f32 %v1986_v50, %v1657_v49  ;;  %v1499_v53 = vpop.f32.mrf.mxu0  ;;  %v3307_v50 = vor.u32 %v3805_v37, %v3304_v38 }
 0x108   : > { %v1828_v54 = vpop.f32.mrf.mxu1 }
 0x109   : > { %2916 = vst [vmem:[%s4505_s1 + $0x30] sm:$0xff] %v2788_v51  ;;  %v2592_v55 = vmul.f32 %v4497_v59, %v1987_v52  ;;  %v1829_v56 = vadd.f32 %v1828_v54, %v1499_v53  ;;  %v3563_v51 = vor.u32 %v3869_v39, %v3560_v40 }
 0x10b   : > { %v2724_v60 = vadd.f32 %v4499_v0, %v2592_v55  ;;  %v2529_v61 = vmul.f32 %v4497_v59, %v1829_v56 }
 0x10d   : > { %v2852_v5 = vmax.f32 %v2724_v60, 0.0  ;;  %v2661_v6 = vadd.f32 %v4499_v0, %v2529_v61  ;;  %v1659_v7 = vpop.f32.mrf.mxu2 }
 0x10e   : > { %v1988_v8 = vpop.f32.mrf.mxu3 }
 0x10f   : > { %2980 = vst [vmem:[%s4505_s1 + $0x230] sm:$0xff] %v2852_v5  ;;  %v2789_v11 = vmax.f32 %v2661_v6, 0.0  ;;  %v1989_v12 = vadd.f32 %v1988_v8, %v1659_v7  ;;  %v1502_v13 = vpop.f32.mrf.mxu0  ;;  %v3310_v5 = vld [vmem:[%s4411_s13 + $0xe0] sm:$0xf]  ;;  %v3808_v6 = vld [vmem:[%s4411_s13 + $0xe4] sm:$0xf0] }
 0x110   : > { %v1831_v16 = vpop.f32.mrf.mxu1 }
 0x111   : > { %2917 = vst [vmem:[%s4505_s1 + $0x38] sm:$0xff] %v2789_v11  ;;  %v2593_v17 = vmul.f32 %v4497_v59, %v1989_v12  ;;  %v1832_v18 = vadd.f32 %v1831_v16, %v1502_v13  ;;  %v3807_v11 = vld [vmem:[%s4411_s13 + $0xe4] sm:$0xf]  ;;  %v3312_v12 = vld [vmem:[%s4411_s13 + $0xe8] sm:$0xf0] }
 0x112   : > { %1541 = vmatmul.bf16.gmra.mxu0 %v3295_v9  ;;  %1701 = vmatmul.bf16.gmra.mxu2 %v3551_v10  ;;  %v3566_v9 = vld [vmem:[%s4411_s13 + $0x2e0] sm:$0xf]  ;;  %v3872_v10 = vld [vmem:[%s4411_s13 + $0x2e4] sm:$0xf0]  ;;  %v3871_v13 = vld [vmem:[%s4411_s13 + $0x2e4] sm:$0xf] }
 0x113   : > { %v2725_v19 = vadd.f32 %v4499_v0, %v2593_v17  ;;  %v2530_v20 = vmul.f32 %v4497_v59, %v1832_v18  ;;  %1870 = vmatmul.bf16.gmra.mxu1 %v3299_v14  ;;  %2030 = vmatmul.bf16.gmra.mxu3 %v3555_v15  ;;  %v3568_v14 = vld [vmem:[%s4411_s13 + $0x2e8] sm:$0xf0] }
 0x115   : > { %v2853_v21 = vmax.f32 %v2725_v19, 0.0  ;;  %v2662_v22 = vadd.f32 %v4499_v0, %v2530_v20  ;;  %v1662_v23 = vpop.f32.mrf.mxu2  ;;  %v3311_v19 = vor.u32 %v3808_v6, %v3310_v5  ;;  %v3567_v20 = vor.u32 %v3872_v10, %v3566_v9 }
 0x116   : > { %v1991_v24 = vpop.f32.mrf.mxu3 }
 0x117   : > { %2981 = vst [vmem:[%s4505_s1 + $0x238] sm:$0xff] %v2853_v21  ;;  %v2790_v25 = vmax.f32 %v2662_v22, 0.0  ;;  %v1992_v26 = vadd.f32 %v1991_v24, %v1662_v23  ;;  %v1504_v27 = vpop.f32.mrf.mxu0  ;;  %v3315_v24 = vor.u32 %v3807_v11, %v3312_v12 }
 0x118   : > { %v1833_v28 = vpop.f32.mrf.mxu1 }
 0x119   : > { %2918 = vst [vmem:[%s4505_s1 + $0x40] sm:$0xff] %v2790_v25  ;;  %v2594_v29 = vmul.f32 %v4497_v59, %v1992_v26  ;;  %v1834_v30 = vadd.f32 %v1833_v28, %v1504_v27  ;;  %v3571_v25 = vor.u32 %v3871_v13, %v3568_v14 }
 0x11b   : > { %v2726_v33 = vadd.f32 %v4499_v0, %v2594_v29  ;;  %v2531_v34 = vmul.f32 %v4497_v59, %v1834_v30 }
 0x11d   : > { %v2854_v41 = vmax.f32 %v2726_v33, 0.0  ;;  %v2663_v42 = vadd.f32 %v4499_v0, %v2531_v34  ;;  %v1664_v43 = vpop.f32.mrf.mxu2 }
 0x11e   : > { %v1993_v44 = vpop.f32.mrf.mxu3 }
 0x11f   : > { %2982 = vst [vmem:[%s4505_s1 + $0x240] sm:$0xff] %v2854_v41  ;;  %v2791_v47 = vmax.f32 %v2663_v42, 0.0  ;;  %v1994_v48 = vadd.f32 %v1993_v44, %v1664_v43  ;;  %v1507_v49 = vpop.f32.mrf.mxu0  ;;  %v3318_v41 = vld [vmem:[%s4411_s13 + $0xf0] sm:$0xf]  ;;  %v3810_v42 = vld [vmem:[%s4411_s13 + $0xf4] sm:$0xf0] }
 0x120   : > { %v1836_v52 = vpop.f32.mrf.mxu1 }
 0x121   : > { %2919 = vst [vmem:[%s4505_s1 + $0x48] sm:$0xff] %v2791_v47  ;;  %v2595_v53 = vmul.f32 %v4497_v59, %v1994_v48  ;;  %v1837_v54 = vadd.f32 %v1836_v52, %v1507_v49  ;;  %v3809_v47 = vld [vmem:[%s4411_s13 + $0xf4] sm:$0xf]  ;;  %v3320_v48 = vld [vmem:[%s4411_s13 + $0xf8] sm:$0xf0] }
 0x122   : > { %1546 = vmatmul.bf16.gmra.mxu0 %v3303_v45  ;;  %1706 = vmatmul.bf16.gmra.mxu2 %v3559_v46  ;;  %v3574_v45 = vld [vmem:[%s4411_s13 + $0x2f0] sm:$0xf]  ;;  %v3874_v46 = vld [vmem:[%s4411_s13 + $0x2f4] sm:$0xf0]  ;;  %v3873_v49 = vld [vmem:[%s4411_s13 + $0x2f4] sm:$0xf] }
 0x123   : > { %v2727_v55 = vadd.f32 %v4499_v0, %v2595_v53  ;;  %v2532_v56 = vmul.f32 %v4497_v59, %v1837_v54  ;;  %1875 = vmatmul.bf16.gmra.mxu1 %v3307_v50  ;;  %2035 = vmatmul.bf16.gmra.mxu3 %v3563_v51  ;;  %v3576_v50 = vld [vmem:[%s4411_s13 + $0x2f8] sm:$0xf0] }
 0x125   : > { %v2855_v57 = vmax.f32 %v2727_v55, 0.0  ;;  %v2664_v58 = vadd.f32 %v4499_v0, %v2532_v56  ;;  %v1667_v60 = vpop.f32.mrf.mxu2  ;;  %v3319_v55 = vor.u32 %v3810_v42, %v3318_v41  ;;  %v3575_v56 = vor.u32 %v3874_v46, %v3574_v45 }
 0x126   : > { %v1996_v61 = vpop.f32.mrf.mxu3 }
 0x127   : > { %2983 = vst [vmem:[%s4505_s1 + $0x248] sm:$0xff] %v2855_v57  ;;  %v2792_v62 = vmax.f32 %v2664_v58, 0.0  ;;  %v1997_v63 = vadd.f32 %v1996_v61, %v1667_v60  ;;  %v1509_v1 = vpop.f32.mrf.mxu0  ;;  %v3323_v61 = vor.u32 %v3809_v47, %v3320_v48 }
 0x128   : > { %v1838_v2 = vpop.f32.mrf.mxu1 }
 0x129   : > { %2920 = vst [vmem:[%s4505_s1 + $0x50] sm:$0xff] %v2792_v62  ;;  %v2596_v3 = vmul.f32 %v4497_v59, %v1997_v63  ;;  %v1839_v4 = vadd.f32 %v1838_v2, %v1509_v1  ;;  %v3579_v62 = vor.u32 %v3873_v49, %v3576_v50 }
 0x12b   : > { %v2728_v7 = vadd.f32 %v4499_v0, %v2596_v3  ;;  %v2533_v8 = vmul.f32 %v4497_v59, %v1839_v4 }
 0x12d   : > { %v2856_v15 = vmax.f32 %v2728_v7, 0.0  ;;  %v2665_v16 = vadd.f32 %v4499_v0, %v2533_v8  ;;  %v1669_v17 = vpop.f32.mrf.mxu2 }
 0x12e   : > { %v1998_v18 = vpop.f32.mrf.mxu3 }
 0x12f   : > { %2984 = vst [vmem:[%s4505_s1 + $0x250] sm:$0xff] %v2856_v15  ;;  %v2793_v21 = vmax.f32 %v2665_v16, 0.0  ;;  %v1999_v22 = vadd.f32 %v1998_v18, %v1669_v17  ;;  %v1512_v23 = vpop.f32.mrf.mxu0  ;;  %v3326_v15 = vld [vmem:[%s4411_s13 + $0x100] sm:$0xf]  ;;  %v3812_v16 = vld [vmem:[%s4411_s13 + $0x104] sm:$0xf0] }
 0x130   : > { %v1841_v26 = vpop.f32.mrf.mxu1 }
 0x131   : > { %2921 = vst [vmem:[%s4505_s1 + $0x58] sm:$0xff] %v2793_v21  ;;  %v2597_v27 = vmul.f32 %v4497_v59, %v1999_v22  ;;  %v1842_v28 = vadd.f32 %v1841_v26, %v1512_v23  ;;  %v3811_v21 = vld [vmem:[%s4411_s13 + $0x104] sm:$0xf]  ;;  %v3328_v22 = vld [vmem:[%s4411_s13 + $0x108] sm:$0xf0] }
 0x132   : > { %1551 = vmatmul.bf16.gmra.mxu0 %v3311_v19  ;;  %1711 = vmatmul.bf16.gmra.mxu2 %v3567_v20  ;;  %v3582_v19 = vld [vmem:[%s4411_s13 + $0x300] sm:$0xf]  ;;  %v3876_v20 = vld [vmem:[%s4411_s13 + $0x304] sm:$0xf0]  ;;  %v3875_v23 = vld [vmem:[%s4411_s13 + $0x304] sm:$0xf] }
 0x133   : > { %v2729_v29 = vadd.f32 %v4499_v0, %v2597_v27  ;;  %v2534_v30 = vmul.f32 %v4497_v59, %v1842_v28  ;;  %1880 = vmatmul.bf16.gmra.mxu1 %v3315_v24  ;;  %2040 = vmatmul.bf16.gmra.mxu3 %v3571_v25  ;;  %v3584_v24 = vld [vmem:[%s4411_s13 + $0x308] sm:$0xf0] }
 0x135   : > { %v2857_v31 = vmax.f32 %v2729_v29, 0.0  ;;  %v2666_v32 = vadd.f32 %v4499_v0, %v2534_v30  ;;  %v1672_v33 = vpop.f32.mrf.mxu2  ;;  %v3327_v29 = vor.u32 %v3812_v16, %v3326_v15  ;;  %v3583_v30 = vor.u32 %v3876_v20, %v3582_v19 }
 0x136   : > { %v2001_v34 = vpop.f32.mrf.mxu3 }
 0x137   : > { %2985 = vst [vmem:[%s4505_s1 + $0x258] sm:$0xff] %v2857_v31  ;;  %v2794_v35 = vmax.f32 %v2666_v32, 0.0  ;;  %v2002_v36 = vadd.f32 %v2001_v34, %v1672_v33  ;;  %v1514_v37 = vpop.f32.mrf.mxu0  ;;  %v3331_v34 = vor.u32 %v3811_v21, %v3328_v22 }
 0x138   : > { %v1843_v38 = vpop.f32.mrf.mxu1 }
 0x139   : > { %2922 = vst [vmem:[%s4505_s1 + $0x60] sm:$0xff] %v2794_v35  ;;  %v2598_v39 = vmul.f32 %v4497_v59, %v2002_v36  ;;  %v1844_v40 = vadd.f32 %v1843_v38, %v1514_v37  ;;  %v3587_v35 = vor.u32 %v3875_v23, %v3584_v24 }
 0x13b   : > { %v2730_v43 = vadd.f32 %v4499_v0, %v2598_v39  ;;  %v2535_v44 = vmul.f32 %v4497_v59, %v1844_v40 }
 0x13d   : > { %v2858_v51 = vmax.f32 %v2730_v43, 0.0  ;;  %v2667_v52 = vadd.f32 %v4499_v0, %v2535_v44  ;;  %v1674_v53 = vpop.f32.mrf.mxu2 }
 0x13e   : > { %v2003_v54 = vpop.f32.mrf.mxu3 }
 0x13f   : > { %2986 = vst [vmem:[%s4505_s1 + $0x260] sm:$0xff] %v2858_v51  ;;  %v2795_v57 = vmax.f32 %v2667_v52, 0.0  ;;  %v2004_v58 = vadd.f32 %v2003_v54, %v1674_v53  ;;  %v1517_v60 = vpop.f32.mrf.mxu0  ;;  %v3334_v51 = vld [vmem:[%s4411_s13 + $0x110] sm:$0xf]  ;;  %v3814_v52 = vld [vmem:[%s4411_s13 + $0x114] sm:$0xf0] }
 0x140   : > { %v1846_v63 = vpop.f32.mrf.mxu1 }
 0x141   : > { %2923 = vst [vmem:[%s4505_s1 + $0x68] sm:$0xff] %v2795_v57  ;;  %v2599_v1 = vmul.f32 %v4497_v59, %v2004_v58  ;;  %v1847_v2 = vadd.f32 %v1846_v63, %v1517_v60  ;;  %v3813_v57 = vld [vmem:[%s4411_s13 + $0x114] sm:$0xf]  ;;  %v3336_v58 = vld [vmem:[%s4411_s13 + $0x118] sm:$0xf0] }
 0x142   : > { %1556 = vmatmul.bf16.gmra.mxu0 %v3319_v55  ;;  %1716 = vmatmul.bf16.gmra.mxu2 %v3575_v56  ;;  %v3590_v55 = vld [vmem:[%s4411_s13 + $0x310] sm:$0xf]  ;;  %v3878_v56 = vld [vmem:[%s4411_s13 + $0x314] sm:$0xf0]  ;;  %v3877_v60 = vld [vmem:[%s4411_s13 + $0x314] sm:$0xf] }
 0x143   : > { %v2731_v3 = vadd.f32 %v4499_v0, %v2599_v1  ;;  %v2536_v4 = vmul.f32 %v4497_v59, %v1847_v2  ;;  %1885 = vmatmul.bf16.gmra.mxu1 %v3323_v61  ;;  %2045 = vmatmul.bf16.gmra.mxu3 %v3579_v62  ;;  %v3592_v61 = vld [vmem:[%s4411_s13 + $0x318] sm:$0xf0] }
 0x145   : > { %v2859_v5 = vmax.f32 %v2731_v3, 0.0  ;;  %v2668_v6 = vadd.f32 %v4499_v0, %v2536_v4  ;;  %v1677_v7 = vpop.f32.mrf.mxu2  ;;  %v3335_v3 = vor.u32 %v3814_v52, %v3334_v51  ;;  %v3591_v4 = vor.u32 %v3878_v56, %v3590_v55 }
 0x146   : > { %v2006_v8 = vpop.f32.mrf.mxu3 }
 0x147   : > { %2987 = vst [vmem:[%s4505_s1 + $0x268] sm:$0xff] %v2859_v5  ;;  %v2796_v9 = vmax.f32 %v2668_v6, 0.0  ;;  %v2007_v10 = vadd.f32 %v2006_v8, %v1677_v7  ;;  %v1519_v11 = vpop.f32.mrf.mxu0  ;;  %v3339_v8 = vor.u32 %v3813_v57, %v3336_v58 }
 0x148   : > { %v1848_v12 = vpop.f32.mrf.mxu1 }
 0x149   : > { %2924 = vst [vmem:[%s4505_s1 + $0x70] sm:$0xff] %v2796_v9  ;;  %v2600_v13 = vmul.f32 %v4497_v59, %v2007_v10  ;;  %v1849_v14 = vadd.f32 %v1848_v12, %v1519_v11  ;;  %v3595_v9 = vor.u32 %v3877_v60, %v3592_v61 }
 0x14b   : > { %v2732_v17 = vadd.f32 %v4499_v0, %v2600_v13  ;;  %v2537_v18 = vmul.f32 %v4497_v59, %v1849_v14 }
 0x14d   : > { %v2860_v25 = vmax.f32 %v2732_v17, 0.0  ;;  %v2669_v26 = vadd.f32 %v4499_v0, %v2537_v18  ;;  %v1679_v27 = vpop.f32.mrf.mxu2 }
 0x14e   : > { %v2008_v28 = vpop.f32.mrf.mxu3 }
 0x14f   : > { %2988 = vst [vmem:[%s4505_s1 + $0x270] sm:$0xff] %v2860_v25  ;;  %v2797_v31 = vmax.f32 %v2669_v26, 0.0  ;;  %v2009_v32 = vadd.f32 %v2008_v28, %v1679_v27  ;;  %v1522_v33 = vpop.f32.mrf.mxu0  ;;  %v3342_v25 = vld [vmem:[%s4411_s13 + $0x120] sm:$0xf]  ;;  %v3816_v26 = vld [vmem:[%s4411_s13 + $0x124] sm:$0xf0] }
 0x150   : > { %v1851_v36 = vpop.f32.mrf.mxu1 }
 0x151   : > { %2925 = vst [vmem:[%s4505_s1 + $0x78] sm:$0xff] %v2797_v31  ;;  %v2601_v37 = vmul.f32 %v4497_v59, %v2009_v32  ;;  %v1852_v38 = vadd.f32 %v1851_v36, %v1522_v33  ;;  %v3815_v31 = vld [vmem:[%s4411_s13 + $0x124] sm:$0xf]  ;;  %v3344_v32 = vld [vmem:[%s4411_s13 + $0x128] sm:$0xf0] }
 0x152   : > { %1561 = vmatmul.bf16.gmra.mxu0 %v3327_v29  ;;  %1721 = vmatmul.bf16.gmra.mxu2 %v3583_v30  ;;  %v3598_v29 = vld [vmem:[%s4411_s13 + $0x320] sm:$0xf]  ;;  %v3880_v30 = vld [vmem:[%s4411_s13 + $0x324] sm:$0xf0]  ;;  %v3879_v33 = vld [vmem:[%s4411_s13 + $0x324] sm:$0xf] }
 0x153   : > { %v2733_v39 = vadd.f32 %v4499_v0, %v2601_v37  ;;  %v2538_v40 = vmul.f32 %v4497_v59, %v1852_v38  ;;  %1890 = vmatmul.bf16.gmra.mxu1 %v3331_v34  ;;  %2050 = vmatmul.bf16.gmra.mxu3 %v3587_v35  ;;  %v3600_v34 = vld [vmem:[%s4411_s13 + $0x328] sm:$0xf0] }
 0x155   : > { %v2861_v41 = vmax.f32 %v2733_v39, 0.0  ;;  %v2670_v42 = vadd.f32 %v4499_v0, %v2538_v40  ;;  %v1682_v43 = vpop.f32.mrf.mxu2  ;;  %v3343_v39 = vor.u32 %v3816_v26, %v3342_v25  ;;  %v3599_v40 = vor.u32 %v3880_v30, %v3598_v29 }
 0x156   : > { %v2011_v44 = vpop.f32.mrf.mxu3 }
 0x157   : > { %2989 = vst [vmem:[%s4505_s1 + $0x278] sm:$0xff] %v2861_v41  ;;  %v2798_v45 = vmax.f32 %v2670_v42, 0.0  ;;  %v2012_v46 = vadd.f32 %v2011_v44, %v1682_v43  ;;  %v1524_v47 = vpop.f32.mrf.mxu0  ;;  %v3347_v44 = vor.u32 %v3815_v31, %v3344_v32 }
 0x158   : > { %v1853_v48 = vpop.f32.mrf.mxu1 }
 0x159   : > { %2926 = vst [vmem:[%s4505_s1 + $0x80] sm:$0xff] %v2798_v45  ;;  %v2602_v49 = vmul.f32 %v4497_v59, %v2012_v46  ;;  %v1854_v50 = vadd.f32 %v1853_v48, %v1524_v47  ;;  %v3603_v45 = vor.u32 %v3879_v33, %v3600_v34 }
 0x15b   : > { %v2734_v53 = vadd.f32 %v4499_v0, %v2602_v49  ;;  %v2539_v54 = vmul.f32 %v4497_v59, %v1854_v50 }
 0x15d   : > { %v2862_v62 = vmax.f32 %v2734_v53, 0.0  ;;  %v2671_v63 = vadd.f32 %v4499_v0, %v2539_v54  ;;  %v1684_v1 = vpop.f32.mrf.mxu2 }
 0x15e   : > { %v2013_v2 = vpop.f32.mrf.mxu3 }
 0x15f   : > { %2990 = vst [vmem:[%s4505_s1 + $0x280] sm:$0xff] %v2862_v62  ;;  %v2799_v5 = vmax.f32 %v2671_v63, 0.0  ;;  %v2014_v6 = vadd.f32 %v2013_v2, %v1684_v1  ;;  %v1527_v7 = vpop.f32.mrf.mxu0  ;;  %v3350_v62 = vld [vmem:[%s4411_s13 + $0x130] sm:$0xf]  ;;  %v3818_v63 = vld [vmem:[%s4411_s13 + $0x134] sm:$0xf0] }
 0x160   : > { %v1856_v10 = vpop.f32.mrf.mxu1 }
 0x161   : > { %2927 = vst [vmem:[%s4505_s1 + $0x88] sm:$0xff] %v2799_v5  ;;  %v2603_v11 = vmul.f32 %v4497_v59, %v2014_v6  ;;  %v1857_v12 = vadd.f32 %v1856_v10, %v1527_v7  ;;  %v3817_v5 = vld [vmem:[%s4411_s13 + $0x134] sm:$0xf]  ;;  %v3352_v6 = vld [vmem:[%s4411_s13 + $0x138] sm:$0xf0] }
 0x162   : > { %1566 = vmatmul.bf16.gmra.mxu0 %v3335_v3  ;;  %1726 = vmatmul.bf16.gmra.mxu2 %v3591_v4  ;;  %v3606_v3 = vld [vmem:[%s4411_s13 + $0x330] sm:$0xf]  ;;  %v3882_v4 = vld [vmem:[%s4411_s13 + $0x334] sm:$0xf0]  ;;  %v3881_v7 = vld [vmem:[%s4411_s13 + $0x334] sm:$0xf] }
 0x163   : > { %v2735_v13 = vadd.f32 %v4499_v0, %v2603_v11  ;;  %v2540_v14 = vmul.f32 %v4497_v59, %v1857_v12  ;;  %1895 = vmatmul.bf16.gmra.mxu1 %v3339_v8  ;;  %2055 = vmatmul.bf16.gmra.mxu3 %v3595_v9  ;;  %v3608_v8 = vld [vmem:[%s4411_s13 + $0x338] sm:$0xf0] }
 0x165   : > { %v2863_v15 = vmax.f32 %v2735_v13, 0.0  ;;  %v2672_v16 = vadd.f32 %v4499_v0, %v2540_v14  ;;  %v1687_v17 = vpop.f32.mrf.mxu2  ;;  %v3351_v13 = vor.u32 %v3818_v63, %v3350_v62  ;;  %v3607_v14 = vor.u32 %v3882_v4, %v3606_v3 }
 0x166   : > { %v2016_v18 = vpop.f32.mrf.mxu3 }
 0x167   : > { %2991 = vst [vmem:[%s4505_s1 + $0x288] sm:$0xff] %v2863_v15  ;;  %v2800_v19 = vmax.f32 %v2672_v16, 0.0  ;;  %v2017_v20 = vadd.f32 %v2016_v18, %v1687_v17  ;;  %v1529_v21 = vpop.f32.mrf.mxu0  ;;  %v3355_v18 = vor.u32 %v3817_v5, %v3352_v6 }
 0x168   : > { %v1858_v22 = vpop.f32.mrf.mxu1 }
 0x169   : > { %2928 = vst [vmem:[%s4505_s1 + $0x90] sm:$0xff] %v2800_v19  ;;  %v2604_v23 = vmul.f32 %v4497_v59, %v2017_v20  ;;  %v1859_v24 = vadd.f32 %v1858_v22, %v1529_v21  ;;  %v3611_v19 = vor.u32 %v3881_v7, %v3608_v8 }
 0x16b   : > { %v2736_v27 = vadd.f32 %v4499_v0, %v2604_v23  ;;  %v2541_v28 = vmul.f32 %v4497_v59, %v1859_v24 }
 0x16d   : > { %v2864_v35 = vmax.f32 %v2736_v27, 0.0  ;;  %v2673_v36 = vadd.f32 %v4499_v0, %v2541_v28  ;;  %v1689_v37 = vpop.f32.mrf.mxu2 }
 0x16e   : > { %v2018_v38 = vpop.f32.mrf.mxu3 }
 0x16f   : > { %2992 = vst [vmem:[%s4505_s1 + $0x290] sm:$0xff] %v2864_v35  ;;  %v2801_v41 = vmax.f32 %v2673_v36, 0.0  ;;  %v2019_v42 = vadd.f32 %v2018_v38, %v1689_v37  ;;  %v1532_v43 = vpop.f32.mrf.mxu0  ;;  %v3358_v35 = vld [vmem:[%s4411_s13 + $0x140] sm:$0xf]  ;;  %v3820_v36 = vld [vmem:[%s4411_s13 + $0x144] sm:$0xf0] }
 0x170   : > { %v1861_v46 = vpop.f32.mrf.mxu1 }
 0x171   : > { %2929 = vst [vmem:[%s4505_s1 + $0x98] sm:$0xff] %v2801_v41  ;;  %v2605_v47 = vmul.f32 %v4497_v59, %v2019_v42  ;;  %v1862_v48 = vadd.f32 %v1861_v46, %v1532_v43  ;;  %v3819_v41 = vld [vmem:[%s4411_s13 + $0x144] sm:$0xf]  ;;  %v3360_v42 = vld [vmem:[%s4411_s13 + $0x148] sm:$0xf0] }
 0x172   : > { %1571 = vmatmul.bf16.gmra.mxu0 %v3343_v39  ;;  %1731 = vmatmul.bf16.gmra.mxu2 %v3599_v40  ;;  %v3614_v39 = vld [vmem:[%s4411_s13 + $0x340] sm:$0xf]  ;;  %v3884_v40 = vld [vmem:[%s4411_s13 + $0x344] sm:$0xf0]  ;;  %v3883_v43 = vld [vmem:[%s4411_s13 + $0x344] sm:$0xf] }
 0x173   : > { %v2737_v49 = vadd.f32 %v4499_v0, %v2605_v47  ;;  %v2542_v50 = vmul.f32 %v4497_v59, %v1862_v48  ;;  %1900 = vmatmul.bf16.gmra.mxu1 %v3347_v44  ;;  %2060 = vmatmul.bf16.gmra.mxu3 %v3603_v45  ;;  %v3616_v44 = vld [vmem:[%s4411_s13 + $0x348] sm:$0xf0]  ;;  %v4739_v46 = vld [vmem:[#allocation9] ss:$0 sm:$0xff] }
 0x175   : > { %v2865_v51 = vmax.f32 %v2737_v49, 0.0  ;;  %v2674_v52 = vadd.f32 %v4499_v0, %v2542_v50  ;;  %v1692_v53 = vpop.f32.mrf.mxu2  ;;  %v3359_v50 = vor.u32 %v3820_v36, %v3358_v35 }
 0x176   : > { %v2021_v54 = vpop.f32.mrf.mxu3 }
 0x177   : > { %2993 = vst [vmem:[%s4505_s1 + $0x298] sm:$0xff] %v2865_v51  ;;  %v2802_v55 = vmax.f32 %v2674_v52, 0.0  ;;  %v2022_v56 = vadd.f32 %v2021_v54, %v1692_v53  ;;  %v1534_v57 = vpop.f32.mrf.mxu0  ;;  %v3615_v51 = vor.u32 %v3884_v40, %v3614_v39  ;;  %v3363_v53 = vor.u32 %v3819_v41, %v3360_v42 }
 0x178   : > { %v1863_v58 = vpop.f32.mrf.mxu1  ;;  %v3619_v54 = vor.u32 %v3883_v43, %v3616_v44 }
 0x179   : > { %2930 = vst [vmem:[%s4505_s1 + $0xa0] sm:$0xff] %v2802_v55  ;;  %v2606_v60 = vmul.f32 %v4497_v59, %v2022_v56  ;;  %v1864_v61 = vadd.f32 %v1863_v58, %v1534_v57  ;;  %v4744_v56 = vld [vmem:[#allocation8] ss:$0 sm:$0xff] }
 0x17b   : > { %v2738_v1 = vadd.f32 %v4499_v0, %v2606_v60  ;;  %v2543_v2 = vmul.f32 %v4497_v59, %v1864_v61 }
 0x17d   : > { %v2866_v9 = vmax.f32 %v2738_v1, 0.0  ;;  %v2675_v10 = vadd.f32 %v4499_v0, %v2543_v2  ;;  %v1694_v11 = vpop.f32.mrf.mxu2 }
 0x17e   : > { %v2023_v12 = vpop.f32.mrf.mxu3 }
 0x17f   : > { %2994 = vst [vmem:[%s4505_s1 + $0x2a0] sm:$0xff] %v2866_v9  ;;  %v2803_v15 = vmax.f32 %v2675_v10, 0.0  ;;  %v2024_v16 = vadd.f32 %v2023_v12, %v1694_v11  ;;  %v1537_v17 = vpop.f32.mrf.mxu0  ;;  %v3366_v9 = vld [vmem:[%s4411_s13 + $0x150] sm:$0xf]  ;;  %v3822_v10 = vld [vmem:[%s4411_s13 + $0x154] sm:$0xf0] }
 0x180   : > { %v1866_v20 = vpop.f32.mrf.mxu1 }
 0x181   : > { %2931 = vst [vmem:[%s4505_s1 + $0xa8] sm:$0xff] %v2803_v15  ;;  %v2607_v21 = vmul.f32 %v4497_v59, %v2024_v16  ;;  %v1867_v22 = vadd.f32 %v1866_v20, %v1537_v17  ;;  %v3821_v15 = vld [vmem:[%s4411_s13 + $0x154] sm:$0xf]  ;;  %v3368_v16 = vld [vmem:[%s4411_s13 + $0x158] sm:$0xf0] }
 0x182   : > { %1576 = vmatmul.bf16.gmra.mxu0 %v3351_v13  ;;  %1736 = vmatmul.bf16.gmra.mxu2 %v3607_v14  ;;  %v3622_v13 = vld [vmem:[%s4411_s13 + $0x350] sm:$0xf]  ;;  %v3886_v14 = vld [vmem:[%s4411_s13 + $0x354] sm:$0xf0]  ;;  %v3885_v17 = vld [vmem:[%s4411_s13 + $0x354] sm:$0xf] }
 0x183   : > { %v2739_v23 = vadd.f32 %v4499_v0, %v2607_v21  ;;  %v2544_v24 = vmul.f32 %v4497_v59, %v1867_v22  ;;  %1905 = vmatmul.bf16.gmra.mxu1 %v3355_v18  ;;  %2065 = vmatmul.bf16.gmra.mxu3 %v3611_v19  ;;  %v3624_v18 = vld [vmem:[%s4411_s13 + $0x358] sm:$0xf0] }
 0x185   : > { %v2867_v25 = vmax.f32 %v2739_v23, 0.0  ;;  %v2676_v26 = vadd.f32 %v4499_v0, %v2544_v24  ;;  %v1697_v27 = vpop.f32.mrf.mxu2  ;;  %v3367_v23 = vor.u32 %v3822_v10, %v3366_v9  ;;  %v3623_v24 = vor.u32 %v3886_v14, %v3622_v13 }
 0x186   : > { %v2026_v28 = vpop.f32.mrf.mxu3 }
 0x187   : > { %2995 = vst [vmem:[%s4505_s1 + $0x2a8] sm:$0xff] %v2867_v25  ;;  %v2804_v29 = vmax.f32 %v2676_v26, 0.0  ;;  %v2027_v30 = vadd.f32 %v2026_v28, %v1697_v27  ;;  %v1539_v31 = vpop.f32.mrf.mxu0  ;;  %v3371_v28 = vor.u32 %v3821_v15, %v3368_v16 }
 0x188   : > { %v1868_v32 = vpop.f32.mrf.mxu1 }
 0x189   : > { %2932 = vst [vmem:[%s4505_s1 + $0xb0] sm:$0xff] %v2804_v29  ;;  %v2608_v33 = vmul.f32 %v4497_v59, %v2027_v30  ;;  %v1869_v34 = vadd.f32 %v1868_v32, %v1539_v31  ;;  %v3627_v29 = vor.u32 %v3885_v17, %v3624_v18 }
 0x18b   : > { %v2740_v37 = vadd.f32 %v4499_v0, %v2608_v33  ;;  %v2545_v38 = vmul.f32 %v4497_v59, %v1869_v34 }
 0x18d   : > { %v2868_v45 = vmax.f32 %v2740_v37, 0.0  ;;  %v2677_v47 = vadd.f32 %v4739_v46, %v2545_v38  ;;  %v1699_v48 = vpop.f32.mrf.mxu2 }
 0x18e   : > { %v2028_v49 = vpop.f32.mrf.mxu3 }
 0x18f   : > { %2996 = vst [vmem:[%s4505_s1 + $0x2b0] sm:$0xff] %v2868_v45  ;;  %v2805_v0 = vmax.f32 %v2677_v47, 0.0  ;;  %v2029_v52 = vadd.f32 %v2028_v49, %v1699_v48  ;;  %v1542_v59 = vpop.f32.mrf.mxu0  ;;  %v3374_v45 = vld [vmem:[%s4411_s13 + $0x160] sm:$0xf]  ;;  %v3824_v47 = vld [vmem:[%s4411_s13 + $0x164] sm:$0xf0] }
 0x190   : > { %v1871_v55 = vpop.f32.mrf.mxu1 }
 0x191   : > { %2933 = vst [vmem:[%s4505_s1 + $0xb8] sm:$0xff] %v2805_v0  ;;  %v2609_v57 = vmul.f32 %v4744_v56, %v2029_v52  ;;  %v1872_v58 = vadd.f32 %v1871_v55, %v1542_v59  ;;  %v3823_v0 = vld [vmem:[%s4411_s13 + $0x164] sm:$0xf]  ;;  %v3376_v52 = vld [vmem:[%s4411_s13 + $0x168] sm:$0xf0] }
 0x192   : > { %1581 = vmatmul.bf16.gmra.mxu0 %v3359_v50  ;;  %1741 = vmatmul.bf16.gmra.mxu2 %v3615_v51  ;;  %v3630_v50 = vld [vmem:[%s4411_s13 + $0x360] sm:$0xf]  ;;  %v3888_v51 = vld [vmem:[%s4411_s13 + $0x364] sm:$0xf0]  ;;  %v3887_v59 = vld [vmem:[%s4411_s13 + $0x364] sm:$0xf] }
 0x193   : > { %v2741_v60 = vadd.f32 %v4739_v46, %v2609_v57  ;;  %v2546_v61 = vmul.f32 %v4744_v56, %v1872_v58  ;;  %1910 = vmatmul.bf16.gmra.mxu1 %v3363_v53  ;;  %2070 = vmatmul.bf16.gmra.mxu3 %v3619_v54  ;;  %v3632_v53 = vld [vmem:[%s4411_s13 + $0x368] sm:$0xf0] }
 0x195   : > { %v2869_v62 = vmax.f32 %v2741_v60, 0.0  ;;  %v2678_v63 = vadd.f32 %v4739_v46, %v2546_v61  ;;  %v1702_v1 = vpop.f32.mrf.mxu2  ;;  %v3375_v60 = vor.u32 %v3824_v47, %v3374_v45  ;;  %v3631_v61 = vor.u32 %v3888_v51, %v3630_v50 }
 0x196   : > { %v2031_v2 = vpop.f32.mrf.mxu3 }
 0x197   : > { %2997 = vst [vmem:[%s4505_s1 + $0x2b8] sm:$0xff] %v2869_v62  ;;  %v2806_v3 = vmax.f32 %v2678_v63, 0.0  ;;  %v2032_v4 = vadd.f32 %v2031_v2, %v1702_v1  ;;  %v1544_v5 = vpop.f32.mrf.mxu0  ;;  %v3379_v2 = vor.u32 %v3823_v0, %v3376_v52 }
 0x198   : > { %v1873_v6 = vpop.f32.mrf.mxu1 }
 0x199   : > { %2934 = vst [vmem:[%s4505_s1 + $0xc0] sm:$0xff] %v2806_v3  ;;  %v2610_v7 = vmul.f32 %v4744_v56, %v2032_v4  ;;  %v1874_v8 = vadd.f32 %v1873_v6, %v1544_v5  ;;  %v3635_v3 = vor.u32 %v3887_v59, %v3632_v53 }
 0x19b   : > { %v2742_v11 = vadd.f32 %v4739_v46, %v2610_v7  ;;  %v2547_v12 = vmul.f32 %v4744_v56, %v1874_v8 }
 0x19d   : > { %v2870_v19 = vmax.f32 %v2742_v11, 0.0  ;;  %v2679_v20 = vadd.f32 %v4739_v46, %v2547_v12  ;;  %v1704_v21 = vpop.f32.mrf.mxu2 }
 0x19e   : > { %v2033_v22 = vpop.f32.mrf.mxu3 }
 0x19f   : > { %2998 = vst [vmem:[%s4505_s1 + $0x2c0] sm:$0xff] %v2870_v19  ;;  %v2807_v25 = vmax.f32 %v2679_v20, 0.0  ;;  %v2034_v26 = vadd.f32 %v2033_v22, %v1704_v21  ;;  %v1547_v27 = vpop.f32.mrf.mxu0  ;;  %v3382_v19 = vld [vmem:[%s4411_s13 + $0x170] sm:$0xf]  ;;  %v3826_v20 = vld [vmem:[%s4411_s13 + $0x174] sm:$0xf0] }
 0x1a0   : > { %v1876_v30 = vpop.f32.mrf.mxu1 }
 0x1a1   : > { %2935 = vst [vmem:[%s4505_s1 + $0xc8] sm:$0xff] %v2807_v25  ;;  %v2611_v31 = vmul.f32 %v4744_v56, %v2034_v26  ;;  %v1877_v32 = vadd.f32 %v1876_v30, %v1547_v27  ;;  %v3825_v25 = vld [vmem:[%s4411_s13 + $0x174] sm:$0xf]  ;;  %v3384_v26 = vld [vmem:[%s4411_s13 + $0x178] sm:$0xf0] }
 0x1a2   : > { %1586 = vmatmul.bf16.gmra.mxu0 %v3367_v23  ;;  %1746 = vmatmul.bf16.gmra.mxu2 %v3623_v24  ;;  %v3638_v23 = vld [vmem:[%s4411_s13 + $0x370] sm:$0xf]  ;;  %v3890_v24 = vld [vmem:[%s4411_s13 + $0x374] sm:$0xf0]  ;;  %v3889_v27 = vld [vmem:[%s4411_s13 + $0x374] sm:$0xf] }
 0x1a3   : > { %v2743_v33 = vadd.f32 %v4739_v46, %v2611_v31  ;;  %v2548_v34 = vmul.f32 %v4744_v56, %v1877_v32  ;;  %1915 = vmatmul.bf16.gmra.mxu1 %v3371_v28  ;;  %2075 = vmatmul.bf16.gmra.mxu3 %v3627_v29  ;;  %v3640_v28 = vld [vmem:[%s4411_s13 + $0x378] sm:$0xf0] }
 0x1a5   : > { %v2871_v35 = vmax.f32 %v2743_v33, 0.0  ;;  %v2680_v36 = vadd.f32 %v4739_v46, %v2548_v34  ;;  %v1707_v37 = vpop.f32.mrf.mxu2  ;;  %v3383_v33 = vor.u32 %v3826_v20, %v3382_v19  ;;  %v3639_v34 = vor.u32 %v3890_v24, %v3638_v23 }
 0x1a6   : > { %v2036_v38 = vpop.f32.mrf.mxu3 }
 0x1a7   : > { %2999 = vst [vmem:[%s4505_s1 + $0x2c8] sm:$0xff] %v2871_v35  ;;  %v2808_v39 = vmax.f32 %v2680_v36, 0.0  ;;  %v2037_v40 = vadd.f32 %v2036_v38, %v1707_v37  ;;  %v1549_v41 = vpop.f32.mrf.mxu0  ;;  %v3387_v38 = vor.u32 %v3825_v25, %v3384_v26 }
 0x1a8   : > { %v1878_v42 = vpop.f32.mrf.mxu1 }
 0x1a9   : > { %2936 = vst [vmem:[%s4505_s1 + $0xd0] sm:$0xff] %v2808_v39  ;;  %v2612_v43 = vmul.f32 %v4744_v56, %v2037_v40  ;;  %v1879_v44 = vadd.f32 %v1878_v42, %v1549_v41  ;;  %v3643_v39 = vor.u32 %v3889_v27, %v3640_v28 }
 0x1ab   : > { %v2744_v48 = vadd.f32 %v4739_v46, %v2612_v43  ;;  %v2549_v49 = vmul.f32 %v4744_v56, %v1879_v44 }
 0x1ad   : > { %v2872_v54 = vmax.f32 %v2744_v48, 0.0  ;;  %v2681_v55 = vadd.f32 %v4739_v46, %v2549_v49  ;;  %v1709_v57 = vpop.f32.mrf.mxu2 }
 0x1ae   : > { %v2038_v58 = vpop.f32.mrf.mxu3 }
 0x1af   : > { %3000 = vst [vmem:[%s4505_s1 + $0x2d0] sm:$0xff] %v2872_v54  ;;  %v2809_v62 = vmax.f32 %v2681_v55, 0.0  ;;  %v2039_v63 = vadd.f32 %v2038_v58, %v1709_v57  ;;  %v1552_v1 = vpop.f32.mrf.mxu0  ;;  %v3390_v54 = vld [vmem:[%s4411_s13 + $0x180] sm:$0xf]  ;;  %v3828_v55 = vld [vmem:[%s4411_s13 + $0x184] sm:$0xf0] }
 0x1b0   : > { %v1881_v4 = vpop.f32.mrf.mxu1 }
 0x1b1   : > { %2937 = vst [vmem:[%s4505_s1 + $0xd8] sm:$0xff] %v2809_v62  ;;  %v2613_v5 = vmul.f32 %v4744_v56, %v2039_v63  ;;  %v1882_v6 = vadd.f32 %v1881_v4, %v1552_v1  ;;  %v3827_v62 = vld [vmem:[%s4411_s13 + $0x184] sm:$0xf]  ;;  %v3392_v63 = vld [vmem:[%s4411_s13 + $0x188] sm:$0xf0] }
 0x1b2   : > { %1591 = vmatmul.bf16.gmra.mxu0 %v3375_v60  ;;  %1751 = vmatmul.bf16.gmra.mxu2 %v3631_v61  ;;  %v3646_v60 = vld [vmem:[%s4411_s13 + $0x380] sm:$0xf]  ;;  %v3892_v61 = vld [vmem:[%s4411_s13 + $0x384] sm:$0xf0]  ;;  %v3891_v1 = vld [vmem:[%s4411_s13 + $0x384] sm:$0xf] }
 0x1b3   : > { %v2745_v7 = vadd.f32 %v4739_v46, %v2613_v5  ;;  %v2550_v8 = vmul.f32 %v4744_v56, %v1882_v6  ;;  %1920 = vmatmul.bf16.gmra.mxu1 %v3379_v2  ;;  %2080 = vmatmul.bf16.gmra.mxu3 %v3635_v3  ;;  %v3648_v2 = vld [vmem:[%s4411_s13 + $0x388] sm:$0xf0] }
 0x1b5   : > { %v2873_v9 = vmax.f32 %v2745_v7, 0.0  ;;  %v2682_v10 = vadd.f32 %v4739_v46, %v2550_v8  ;;  %v1712_v11 = vpop.f32.mrf.mxu2  ;;  %v3391_v7 = vor.u32 %v3828_v55, %v3390_v54  ;;  %v3647_v8 = vor.u32 %v3892_v61, %v3646_v60 }
 0x1b6   : > { %v2041_v12 = vpop.f32.mrf.mxu3 }
 0x1b7   : > { %3001 = vst [vmem:[%s4505_s1 + $0x2d8] sm:$0xff] %v2873_v9  ;;  %v2810_v13 = vmax.f32 %v2682_v10, 0.0  ;;  %v2042_v14 = vadd.f32 %v2041_v12, %v1712_v11  ;;  %v1554_v15 = vpop.f32.mrf.mxu0  ;;  %v3395_v12 = vor.u32 %v3827_v62, %v3392_v63 }
 0x1b8   : > { %v1883_v16 = vpop.f32.mrf.mxu1 }
 0x1b9   : > { %2938 = vst [vmem:[%s4505_s1 + $0xe0] sm:$0xff] %v2810_v13  ;;  %v2614_v17 = vmul.f32 %v4744_v56, %v2042_v14  ;;  %v1884_v18 = vadd.f32 %v1883_v16, %v1554_v15  ;;  %v3651_v13 = vor.u32 %v3891_v1, %v3648_v2 }
 0x1bb   : > { %v2746_v21 = vadd.f32 %v4739_v46, %v2614_v17  ;;  %v2551_v22 = vmul.f32 %v4744_v56, %v1884_v18 }
 0x1bd   : > { %v2874_v29 = vmax.f32 %v2746_v21, 0.0  ;;  %v2683_v30 = vadd.f32 %v4739_v46, %v2551_v22  ;;  %v1714_v31 = vpop.f32.mrf.mxu2 }
 0x1be   : > { %v2043_v32 = vpop.f32.mrf.mxu3 }
 0x1bf   : > { %3002 = vst [vmem:[%s4505_s1 + $0x2e0] sm:$0xff] %v2874_v29  ;;  %v2811_v35 = vmax.f32 %v2683_v30, 0.0  ;;  %v2044_v36 = vadd.f32 %v2043_v32, %v1714_v31  ;;  %v1557_v37 = vpop.f32.mrf.mxu0  ;;  %v3398_v29 = vld [vmem:[%s4411_s13 + $0x190] sm:$0xf]  ;;  %v3830_v30 = vld [vmem:[%s4411_s13 + $0x194] sm:$0xf0] }
 0x1c0   : > { %v1886_v40 = vpop.f32.mrf.mxu1 }
 0x1c1   : > { %2939 = vst [vmem:[%s4505_s1 + $0xe8] sm:$0xff] %v2811_v35  ;;  %v2615_v41 = vmul.f32 %v4744_v56, %v2044_v36  ;;  %v1887_v42 = vadd.f32 %v1886_v40, %v1557_v37  ;;  %v3829_v35 = vld [vmem:[%s4411_s13 + $0x194] sm:$0xf]  ;;  %v3400_v36 = vld [vmem:[%s4411_s13 + $0x198] sm:$0xf0] }
 0x1c2   : > { %1596 = vmatmul.bf16.gmra.mxu0 %v3383_v33  ;;  %1756 = vmatmul.bf16.gmra.mxu2 %v3639_v34  ;;  %v3654_v33 = vld [vmem:[%s4411_s13 + $0x390] sm:$0xf]  ;;  %v3894_v34 = vld [vmem:[%s4411_s13 + $0x394] sm:$0xf0]  ;;  %v3893_v37 = vld [vmem:[%s4411_s13 + $0x394] sm:$0xf] }
 0x1c3   : > { %v2747_v43 = vadd.f32 %v4739_v46, %v2615_v41  ;;  %v2552_v44 = vmul.f32 %v4744_v56, %v1887_v42  ;;  %1925 = vmatmul.bf16.gmra.mxu1 %v3387_v38  ;;  %2085 = vmatmul.bf16.gmra.mxu3 %v3643_v39  ;;  %v3656_v38 = vld [vmem:[%s4411_s13 + $0x398] sm:$0xf0] }
 0x1c5   : > { %v2875_v45 = vmax.f32 %v2747_v43, 0.0  ;;  %v2684_v47 = vadd.f32 %v4739_v46, %v2552_v44  ;;  %v1717_v48 = vpop.f32.mrf.mxu2  ;;  %v3399_v43 = vor.u32 %v3830_v30, %v3398_v29  ;;  %v3655_v44 = vor.u32 %v3894_v34, %v3654_v33 }
 0x1c6   : > { %v2046_v49 = vpop.f32.mrf.mxu3 }
 0x1c7   : > { %3003 = vst [vmem:[%s4505_s1 + $0x2e8] sm:$0xff] %v2875_v45  ;;  %v2812_v50 = vmax.f32 %v2684_v47, 0.0  ;;  %v2047_v51 = vadd.f32 %v2046_v49, %v1717_v48  ;;  %v1559_v0 = vpop.f32.mrf.mxu0  ;;  %v3403_v49 = vor.u32 %v3829_v35, %v3400_v36 }
 0x1c8   : > { %v1888_v52 = vpop.f32.mrf.mxu1 }
 0x1c9   : > { %2940 = vst [vmem:[%s4505_s1 + $0xf0] sm:$0xff] %v2812_v50  ;;  %v2616_v59 = vmul.f32 %v4744_v56, %v2047_v51  ;;  %v1889_v53 = vadd.f32 %v1888_v52, %v1559_v0  ;;  %v3659_v50 = vor.u32 %v3893_v37, %v3656_v38 }
 0x1cb   : > { %v2748_v57 = vadd.f32 %v4739_v46, %v2616_v59  ;;  %v2553_v58 = vmul.f32 %v4744_v56, %v1889_v53 }
 0x1cd   : > { %v2876_v3 = vmax.f32 %v2748_v57, 0.0  ;;  %v2685_v4 = vadd.f32 %v4739_v46, %v2553_v58  ;;  %v1719_v5 = vpop.f32.mrf.mxu2 }
 0x1ce   : > { %v2048_v6 = vpop.f32.mrf.mxu3 }
 0x1cf   : > { %3004 = vst [vmem:[%s4505_s1 + $0x2f0] sm:$0xff] %v2876_v3  ;;  %v2813_v9 = vmax.f32 %v2685_v4, 0.0  ;;  %v2049_v10 = vadd.f32 %v2048_v6, %v1719_v5  ;;  %v1562_v11 = vpop.f32.mrf.mxu0  ;;  %v3406_v3 = vld [vmem:[%s4411_s13 + $0x1a0] sm:$0xf]  ;;  %v3832_v4 = vld [vmem:[%s4411_s13 + $0x1a4] sm:$0xf0] }
 0x1d0   : > { %v1891_v14 = vpop.f32.mrf.mxu1 }
 0x1d1   : > { %2941 = vst [vmem:[%s4505_s1 + $0xf8] sm:$0xff] %v2813_v9  ;;  %v2617_v15 = vmul.f32 %v4744_v56, %v2049_v10  ;;  %v1892_v16 = vadd.f32 %v1891_v14, %v1562_v11  ;;  %v3831_v9 = vld [vmem:[%s4411_s13 + $0x1a4] sm:$0xf]  ;;  %v3408_v10 = vld [vmem:[%s4411_s13 + $0x1a8] sm:$0xf0] }
 0x1d2   : > { %1601 = vmatmul.bf16.gmra.mxu0 %v3391_v7  ;;  %1761 = vmatmul.bf16.gmra.mxu2 %v3647_v8  ;;  %v3662_v7 = vld [vmem:[%s4411_s13 + $0x3a0] sm:$0xf]  ;;  %v3896_v8 = vld [vmem:[%s4411_s13 + $0x3a4] sm:$0xf0]  ;;  %v3895_v11 = vld [vmem:[%s4411_s13 + $0x3a4] sm:$0xf] }
 0x1d3   : > { %v2749_v17 = vadd.f32 %v4739_v46, %v2617_v15  ;;  %v2554_v18 = vmul.f32 %v4744_v56, %v1892_v16  ;;  %1930 = vmatmul.bf16.gmra.mxu1 %v3395_v12  ;;  %2090 = vmatmul.bf16.gmra.mxu3 %v3651_v13  ;;  %v3664_v12 = vld [vmem:[%s4411_s13 + $0x3a8] sm:$0xf0] }
 0x1d5   : > { %v2877_v19 = vmax.f32 %v2749_v17, 0.0  ;;  %v2686_v20 = vadd.f32 %v4739_v46, %v2554_v18  ;;  %v1722_v21 = vpop.f32.mrf.mxu2  ;;  %v3407_v17 = vor.u32 %v3832_v4, %v3406_v3  ;;  %v3663_v18 = vor.u32 %v3896_v8, %v3662_v7 }
 0x1d6   : > { %v2051_v22 = vpop.f32.mrf.mxu3 }
 0x1d7   : > { %3005 = vst [vmem:[%s4505_s1 + $0x2f8] sm:$0xff] %v2877_v19  ;;  %v2814_v23 = vmax.f32 %v2686_v20, 0.0  ;;  %v2052_v24 = vadd.f32 %v2051_v22, %v1722_v21  ;;  %v1564_v25 = vpop.f32.mrf.mxu0  ;;  %v3411_v22 = vor.u32 %v3831_v9, %v3408_v10 }
 0x1d8   : > { %v1893_v26 = vpop.f32.mrf.mxu1 }
 0x1d9   : > { %2942 = vst [vmem:[%s4505_s1 + $0x100] sm:$0xff] %v2814_v23  ;;  %v2618_v27 = vmul.f32 %v4744_v56, %v2052_v24  ;;  %v1894_v28 = vadd.f32 %v1893_v26, %v1564_v25  ;;  %v3667_v23 = vor.u32 %v3895_v11, %v3664_v12 }
 0x1db   : > { %v2750_v31 = vadd.f32 %v4739_v46, %v2618_v27  ;;  %v2555_v32 = vmul.f32 %v4744_v56, %v1894_v28 }
 0x1dd   : > { %v2878_v39 = vmax.f32 %v2750_v31, 0.0  ;;  %v2687_v40 = vadd.f32 %v4739_v46, %v2555_v32  ;;  %v1724_v41 = vpop.f32.mrf.mxu2 }
 0x1de   : > { %v2053_v42 = vpop.f32.mrf.mxu3 }
 0x1df   : > { %3006 = vst [vmem:[%s4505_s1 + $0x300] sm:$0xff] %v2878_v39  ;;  %v2815_v45 = vmax.f32 %v2687_v40, 0.0  ;;  %v2054_v47 = vadd.f32 %v2053_v42, %v1724_v41  ;;  %v1567_v48 = vpop.f32.mrf.mxu0  ;;  %v3414_v39 = vld [vmem:[%s4411_s13 + $0x1b0] sm:$0xf]  ;;  %v3834_v40 = vld [vmem:[%s4411_s13 + $0x1b4] sm:$0xf0] }
 0x1e0   : > { %v1896_v51 = vpop.f32.mrf.mxu1 }
 0x1e1   : > { %2943 = vst [vmem:[%s4505_s1 + $0x108] sm:$0xff] %v2815_v45  ;;  %v2619_v0 = vmul.f32 %v4744_v56, %v2054_v47  ;;  %v1897_v52 = vadd.f32 %v1896_v51, %v1567_v48  ;;  %v3833_v45 = vld [vmem:[%s4411_s13 + $0x1b4] sm:$0xf]  ;;  %v3416_v47 = vld [vmem:[%s4411_s13 + $0x1b8] sm:$0xf0] }
 0x1e2   : > { %1606 = vmatmul.bf16.gmra.mxu0 %v3399_v43  ;;  %1766 = vmatmul.bf16.gmra.mxu2 %v3655_v44  ;;  %v3670_v43 = vld [vmem:[%s4411_s13 + $0x3b0] sm:$0xf]  ;;  %v3898_v44 = vld [vmem:[%s4411_s13 + $0x3b4] sm:$0xf0]  ;;  %v3897_v48 = vld [vmem:[%s4411_s13 + $0x3b4] sm:$0xf] }
 0x1e3   : > { %v2751_v59 = vadd.f32 %v4739_v46, %v2619_v0  ;;  %v2556_v53 = vmul.f32 %v4744_v56, %v1897_v52  ;;  %1935 = vmatmul.bf16.gmra.mxu1 %v3403_v49  ;;  %2095 = vmatmul.bf16.gmra.mxu3 %v3659_v50  ;;  %v3672_v49 = vld [vmem:[%s4411_s13 + $0x3b8] sm:$0xf0] }
 0x1e5   : > { %v2879_v54 = vmax.f32 %v2751_v59, 0.0  ;;  %v2688_v55 = vadd.f32 %v4739_v46, %v2556_v53  ;;  %v1727_v57 = vpop.f32.mrf.mxu2  ;;  %v3415_v59 = vor.u32 %v3834_v40, %v3414_v39  ;;  %v3671_v53 = vor.u32 %v3898_v44, %v3670_v43 }
 0x1e6   : > { %v2056_v58 = vpop.f32.mrf.mxu3 }
 0x1e7   : > { %3007 = vst [vmem:[%s4505_s1 + $0x308] sm:$0xff] %v2879_v54  ;;  %v2816_v60 = vmax.f32 %v2688_v55, 0.0  ;;  %v2057_v61 = vadd.f32 %v2056_v58, %v1727_v57  ;;  %v1569_v62 = vpop.f32.mrf.mxu0  ;;  %v3419_v58 = vor.u32 %v3833_v45, %v3416_v47 }
 0x1e8   : > { %v1898_v63 = vpop.f32.mrf.mxu1 }
 0x1e9   : > { %2944 = vst [vmem:[%s4505_s1 + $0x110] sm:$0xff] %v2816_v60  ;;  %v2620_v1 = vmul.f32 %v4744_v56, %v2057_v61  ;;  %v1899_v2 = vadd.f32 %v1898_v63, %v1569_v62  ;;  %v3675_v60 = vor.u32 %v3897_v48, %v3672_v49 }
 0x1eb   : > { %v2752_v5 = vadd.f32 %v4739_v46, %v2620_v1  ;;  %v2557_v6 = vmul.f32 %v4744_v56, %v1899_v2 }
 0x1ed   : > { %v2880_v13 = vmax.f32 %v2752_v5, 0.0  ;;  %v2689_v14 = vadd.f32 %v4739_v46, %v2557_v6  ;;  %v1729_v15 = vpop.f32.mrf.mxu2 }
 0x1ee   : > { %v2058_v16 = vpop.f32.mrf.mxu3 }
 0x1ef   : > { %3008 = vst [vmem:[%s4505_s1 + $0x310] sm:$0xff] %v2880_v13  ;;  %v2817_v19 = vmax.f32 %v2689_v14, 0.0  ;;  %v2059_v20 = vadd.f32 %v2058_v16, %v1729_v15  ;;  %v1572_v21 = vpop.f32.mrf.mxu0  ;;  %v3422_v13 = vld [vmem:[%s4411_s13 + $0x1c0] sm:$0xf]  ;;  %v3836_v14 = vld [vmem:[%s4411_s13 + $0x1c4] sm:$0xf0] }
 0x1f0   : > { %v1901_v24 = vpop.f32.mrf.mxu1 }
 0x1f1   : > { %2945 = vst [vmem:[%s4505_s1 + $0x118] sm:$0xff] %v2817_v19  ;;  %v2621_v25 = vmul.f32 %v4744_v56, %v2059_v20  ;;  %v1902_v26 = vadd.f32 %v1901_v24, %v1572_v21  ;;  %v3835_v19 = vld [vmem:[%s4411_s13 + $0x1c4] sm:$0xf]  ;;  %v3424_v20 = vld [vmem:[%s4411_s13 + $0x1c8] sm:$0xf0] }
 0x1f2   : > { %1611 = vmatmul.bf16.gmra.mxu0 %v3407_v17  ;;  %1771 = vmatmul.bf16.gmra.mxu2 %v3663_v18  ;;  %v3678_v17 = vld [vmem:[%s4411_s13 + $0x3c0] sm:$0xf]  ;;  %v3900_v18 = vld [vmem:[%s4411_s13 + $0x3c4] sm:$0xf0]  ;;  %v3899_v21 = vld [vmem:[%s4411_s13 + $0x3c4] sm:$0xf] }
 0x1f3   : > { %v2753_v27 = vadd.f32 %v4739_v46, %v2621_v25  ;;  %v2558_v28 = vmul.f32 %v4744_v56, %v1902_v26  ;;  %1940 = vmatmul.bf16.gmra.mxu1 %v3411_v22  ;;  %2100 = vmatmul.bf16.gmra.mxu3 %v3667_v23  ;;  %v3680_v22 = vld [vmem:[%s4411_s13 + $0x3c8] sm:$0xf0] }
 0x1f5   : > { %v2881_v29 = vmax.f32 %v2753_v27, 0.0  ;;  %v2690_v30 = vadd.f32 %v4739_v46, %v2558_v28  ;;  %v1732_v31 = vpop.f32.mrf.mxu2  ;;  %v3423_v27 = vor.u32 %v3836_v14, %v3422_v13  ;;  %v3679_v28 = vor.u32 %v3900_v18, %v3678_v17 }
 0x1f6   : > { %v2061_v32 = vpop.f32.mrf.mxu3 }
 0x1f7   : > { %3009 = vst [vmem:[%s4505_s1 + $0x318] sm:$0xff] %v2881_v29  ;;  %v2818_v33 = vmax.f32 %v2690_v30, 0.0  ;;  %v2062_v34 = vadd.f32 %v2061_v32, %v1732_v31  ;;  %v1574_v35 = vpop.f32.mrf.mxu0  ;;  %v3427_v32 = vor.u32 %v3835_v19, %v3424_v20 }
 0x1f8   : > { %v1903_v36 = vpop.f32.mrf.mxu1 }
 0x1f9   : > { %2946 = vst [vmem:[%s4505_s1 + $0x120] sm:$0xff] %v2818_v33  ;;  %v2622_v37 = vmul.f32 %v4744_v56, %v2062_v34  ;;  %v1904_v38 = vadd.f32 %v1903_v36, %v1574_v35  ;;  %v3683_v33 = vor.u32 %v3899_v21, %v3680_v22 }
 0x1fb   : > { %v2754_v41 = vadd.f32 %v4739_v46, %v2622_v37  ;;  %v2559_v42 = vmul.f32 %v4744_v56, %v1904_v38 }
 0x1fd   : > { %v2882_v50 = vmax.f32 %v2754_v41, 0.0  ;;  %v2691_v51 = vadd.f32 %v4739_v46, %v2559_v42  ;;  %v1734_v0 = vpop.f32.mrf.mxu2 }
 0x1fe   : > { %v2063_v52 = vpop.f32.mrf.mxu3 }
 0x1ff   : > { %3010 = vst [vmem:[%s4505_s1 + $0x320] sm:$0xff] %v2882_v50  ;;  %v2819_v54 = vmax.f32 %v2691_v51, 0.0  ;;  %v2064_v55 = vadd.f32 %v2063_v52, %v1734_v0  ;;  %v1577_v57 = vpop.f32.mrf.mxu0  ;;  %v3430_v50 = vld [vmem:[%s4411_s13 + $0x1d0] sm:$0xf]  ;;  %v3838_v51 = vld [vmem:[%s4411_s13 + $0x1d4] sm:$0xf0] }
 0x200   : > { %v1906_v61 = vpop.f32.mrf.mxu1 }
 0x201   : > { %2947 = vst [vmem:[%s4505_s1 + $0x128] sm:$0xff] %v2819_v54  ;;  %v2623_v62 = vmul.f32 %v4744_v56, %v2064_v55  ;;  %v1907_v63 = vadd.f32 %v1906_v61, %v1577_v57  ;;  %v3837_v54 = vld [vmem:[%s4411_s13 + $0x1d4] sm:$0xf]  ;;  %v3432_v55 = vld [vmem:[%s4411_s13 + $0x1d8] sm:$0xf0] }
 0x202   : > { %1616 = vmatmul.bf16.gmra.mxu0 %v3415_v59  ;;  %1776 = vmatmul.bf16.gmra.mxu2 %v3671_v53  ;;  %v3686_v59 = vld [vmem:[%s4411_s13 + $0x3d0] sm:$0xf]  ;;  %v3902_v53 = vld [vmem:[%s4411_s13 + $0x3d4] sm:$0xf0]  ;;  %v3901_v57 = vld [vmem:[%s4411_s13 + $0x3d4] sm:$0xf] }
 0x203   : > { %v2755_v1 = vadd.f32 %v4739_v46, %v2623_v62  ;;  %v2560_v2 = vmul.f32 %v4744_v56, %v1907_v63  ;;  %1945 = vmatmul.bf16.gmra.mxu1 %v3419_v58  ;;  %2105 = vmatmul.bf16.gmra.mxu3 %v3675_v60  ;;  %v3688_v58 = vld [vmem:[%s4411_s13 + $0x3d8] sm:$0xf0] }
 0x205   : > { %v2883_v3 = vmax.f32 %v2755_v1, 0.0  ;;  %v2692_v4 = vadd.f32 %v4739_v46, %v2560_v2  ;;  %v1737_v5 = vpop.f32.mrf.mxu2  ;;  %v3431_v1 = vor.u32 %v3838_v51, %v3430_v50  ;;  %v3687_v2 = vor.u32 %v3902_v53, %v3686_v59 }
 0x206   : > { %v2066_v6 = vpop.f32.mrf.mxu3 }
 0x207   : > { %3011 = vst [vmem:[%s4505_s1 + $0x328] sm:$0xff] %v2883_v3  ;;  %v2820_v7 = vmax.f32 %v2692_v4, 0.0  ;;  %v2067_v8 = vadd.f32 %v2066_v6, %v1737_v5  ;;  %v1579_v9 = vpop.f32.mrf.mxu0  ;;  %v3435_v6 = vor.u32 %v3837_v54, %v3432_v55 }
 0x208   : > { %v1908_v10 = vpop.f32.mrf.mxu1 }
 0x209   : > { %2948 = vst [vmem:[%s4505_s1 + $0x130] sm:$0xff] %v2820_v7  ;;  %v2624_v11 = vmul.f32 %v4744_v56, %v2067_v8  ;;  %v1909_v12 = vadd.f32 %v1908_v10, %v1579_v9  ;;  %v3691_v7 = vor.u32 %v3901_v57, %v3688_v58 }
 0x20b   : > { %v2756_v15 = vadd.f32 %v4739_v46, %v2624_v11  ;;  %v2561_v16 = vmul.f32 %v4744_v56, %v1909_v12 }
 0x20d   : > { %v2884_v23 = vmax.f32 %v2756_v15, 0.0  ;;  %v2693_v24 = vadd.f32 %v4739_v46, %v2561_v16  ;;  %v1739_v25 = vpop.f32.mrf.mxu2 }
 0x20e   : > { %v2068_v26 = vpop.f32.mrf.mxu3 }
 0x20f   : > { %3012 = vst [vmem:[%s4505_s1 + $0x330] sm:$0xff] %v2884_v23  ;;  %v2821_v29 = vmax.f32 %v2693_v24, 0.0  ;;  %v2069_v30 = vadd.f32 %v2068_v26, %v1739_v25  ;;  %v1582_v31 = vpop.f32.mrf.mxu0  ;;  %v3438_v23 = vld [vmem:[%s4411_s13 + $0x1e0] sm:$0xf]  ;;  %v3840_v24 = vld [vmem:[%s4411_s13 + $0x1e4] sm:$0xf0] }
 0x210   : > { %v1911_v34 = vpop.f32.mrf.mxu1 }
 0x211   : > { %2949 = vst [vmem:[%s4505_s1 + $0x138] sm:$0xff] %v2821_v29  ;;  %v2625_v35 = vmul.f32 %v4744_v56, %v2069_v30  ;;  %v1912_v36 = vadd.f32 %v1911_v34, %v1582_v31  ;;  %v3839_v29 = vld [vmem:[%s4411_s13 + $0x1e4] sm:$0xf]  ;;  %v3440_v30 = vld [vmem:[%s4411_s13 + $0x1e8] sm:$0xf0] }
 0x212   : > { %1621 = vmatmul.bf16.gmra.mxu0 %v3423_v27  ;;  %1781 = vmatmul.bf16.gmra.mxu2 %v3679_v28  ;;  %v3694_v27 = vld [vmem:[%s4411_s13 + $0x3e0] sm:$0xf]  ;;  %v3904_v28 = vld [vmem:[%s4411_s13 + $0x3e4] sm:$0xf0]  ;;  %v3903_v31 = vld [vmem:[%s4411_s13 + $0x3e4] sm:$0xf] }
 0x213   : > { %v2757_v37 = vadd.f32 %v4739_v46, %v2625_v35  ;;  %v2562_v38 = vmul.f32 %v4744_v56, %v1912_v36  ;;  %1950 = vmatmul.bf16.gmra.mxu1 %v3427_v32  ;;  %2110 = vmatmul.bf16.gmra.mxu3 %v3683_v33  ;;  %v3696_v32 = vld [vmem:[%s4411_s13 + $0x3e8] sm:$0xf0] }
 0x215   : > { %v2885_v39 = vmax.f32 %v2757_v37, 0.0  ;;  %v2694_v40 = vadd.f32 %v4739_v46, %v2562_v38  ;;  %v1742_v41 = vpop.f32.mrf.mxu2  ;;  %v3439_v37 = vor.u32 %v3840_v24, %v3438_v23  ;;  %v3695_v38 = vor.u32 %v3904_v28, %v3694_v27 }
 0x216   : > { %v2071_v42 = vpop.f32.mrf.mxu3 }
 0x217   : > { %3013 = vst [vmem:[%s4505_s1 + $0x338] sm:$0xff] %v2885_v39  ;;  %v2822_v43 = vmax.f32 %v2694_v40, 0.0  ;;  %v2072_v44 = vadd.f32 %v2071_v42, %v1742_v41  ;;  %v1584_v45 = vpop.f32.mrf.mxu0  ;;  %v3443_v42 = vor.u32 %v3839_v29, %v3440_v30 }
 0x218   : > { %v1913_v47 = vpop.f32.mrf.mxu1 }
 0x219   : > { %2950 = vst [vmem:[%s4505_s1 + $0x140] sm:$0xff] %v2822_v43  ;;  %v2626_v48 = vmul.f32 %v4744_v56, %v2072_v44  ;;  %v1914_v49 = vadd.f32 %v1913_v47, %v1584_v45  ;;  %v3699_v43 = vor.u32 %v3903_v31, %v3696_v32 }
 0x21b   : > { %v2758_v0 = vadd.f32 %v4739_v46, %v2626_v48  ;;  %v2563_v52 = vmul.f32 %v4744_v56, %v1914_v49 }
 0x21d   : > { %v2886_v60 = vmax.f32 %v2758_v0, 0.0  ;;  %v2695_v61 = vadd.f32 %v4739_v46, %v2563_v52  ;;  %v1744_v62 = vpop.f32.mrf.mxu2 }
 0x21e   : > { %v2073_v63 = vpop.f32.mrf.mxu3 }
 0x21f   : > { %3014 = vst [vmem:[%s4505_s1 + $0x340] sm:$0xff] %v2886_v60  ;;  %v2823_v3 = vmax.f32 %v2695_v61, 0.0  ;;  %v2074_v4 = vadd.f32 %v2073_v63, %v1744_v62  ;;  %v1587_v5 = vpop.f32.mrf.mxu0  ;;  %v3446_v60 = vld [vmem:[%s4411_s13 + $0x1f0] sm:$0xf]  ;;  %v3842_v61 = vld [vmem:[%s4411_s13 + $0x1f4] sm:$0xf0] }
 0x220   : > { %v1916_v8 = vpop.f32.mrf.mxu1 }
 0x221   : > { %2951 = vst [vmem:[%s4505_s1 + $0x148] sm:$0xff] %v2823_v3  ;;  %v2627_v9 = vmul.f32 %v4744_v56, %v2074_v4  ;;  %v1917_v10 = vadd.f32 %v1916_v8, %v1587_v5  ;;  %v3841_v3 = vld [vmem:[%s4411_s13 + $0x1f4] sm:$0xf]  ;;  %v3448_v4 = vld [vmem:[%s4411_s13 + $0x1f8] sm:$0xf0] }
 0x222   : > { %1626 = vmatmul.bf16.gmra.mxu0 %v3431_v1  ;;  %1786 = vmatmul.bf16.gmra.mxu2 %v3687_v2  ;;  %v3702_v1 = vld [vmem:[%s4411_s13 + $0x3f0] sm:$0xf]  ;;  %v3906_v2 = vld [vmem:[%s4411_s13 + $0x3f4] sm:$0xf0]  ;;  %v3905_v5 = vld [vmem:[%s4411_s13 + $0x3f4] sm:$0xf] }
 0x223   : > { %v2759_v11 = vadd.f32 %v4739_v46, %v2627_v9  ;;  %v2564_v12 = vmul.f32 %v4744_v56, %v1917_v10  ;;  %1955 = vmatmul.bf16.gmra.mxu1 %v3435_v6  ;;  %2115 = vmatmul.bf16.gmra.mxu3 %v3691_v7  ;;  %v3704_v6 = vld [vmem:[%s4411_s13 + $0x3f8] sm:$0xf0] }
 0x225   : > { %v2887_v13 = vmax.f32 %v2759_v11, 0.0  ;;  %v2696_v14 = vadd.f32 %v4739_v46, %v2564_v12  ;;  %v1747_v15 = vpop.f32.mrf.mxu2  ;;  %v3447_v11 = vor.u32 %v3842_v61, %v3446_v60  ;;  %v3703_v12 = vor.u32 %v3906_v2, %v3702_v1 }
 0x226   : > { %v2076_v16 = vpop.f32.mrf.mxu3 }
 0x227   : > { %3015 = vst [vmem:[%s4505_s1 + $0x348] sm:$0xff] %v2887_v13  ;;  %v2824_v17 = vmax.f32 %v2696_v14, 0.0  ;;  %v2077_v18 = vadd.f32 %v2076_v16, %v1747_v15  ;;  %v1589_v19 = vpop.f32.mrf.mxu0  ;;  %v3451_v16 = vor.u32 %v3841_v3, %v3448_v4 }
 0x228   : > { %v1918_v20 = vpop.f32.mrf.mxu1 }
 0x229   : > { %2952 = vst [vmem:[%s4505_s1 + $0x150] sm:$0xff] %v2824_v17  ;;  %v2628_v21 = vmul.f32 %v4744_v56, %v2077_v18  ;;  %v1919_v22 = vadd.f32 %v1918_v20, %v1589_v19  ;;  %v3707_v17 = vor.u32 %v3905_v5, %v3704_v6 }
 0x22b   : > { %v2760_v25 = vadd.f32 %v4739_v46, %v2628_v21  ;;  %v2565_v26 = vmul.f32 %v4744_v56, %v1919_v22 }
 0x22d   : > { %v2888_v33 = vmax.f32 %v2760_v25, 0.0  ;;  %v2697_v34 = vadd.f32 %v4739_v46, %v2565_v26  ;;  %v1749_v35 = vpop.f32.mrf.mxu2 }
 0x22e   : > { %v2078_v36 = vpop.f32.mrf.mxu3 }
 0x22f   : > { %3016 = vst [vmem:[%s4505_s1 + $0x350] sm:$0xff] %v2888_v33  ;;  %v2825_v39 = vmax.f32 %v2697_v34, 0.0  ;;  %v2079_v40 = vadd.f32 %v2078_v36, %v1749_v35  ;;  %v1592_v41 = vpop.f32.mrf.mxu0  ;;  %v4973_v33 = vld [vmem:[#allocation9] ss:$0 sm:$0xff] }
 0x230   : > { %v1921_v44 = vpop.f32.mrf.mxu1 }
 0x231   : > { %2953 = vst [vmem:[%s4505_s1 + $0x158] sm:$0xff] %v2825_v39  ;;  %v2629_v45 = vmul.f32 %v4744_v56, %v2079_v40  ;;  %v1922_v47 = vadd.f32 %v1921_v44, %v1592_v41 }
 0x232   : > { %1631 = vmatmul.bf16.gmra.mxu0 %v3439_v37  ;;  %1791 = vmatmul.bf16.gmra.mxu2 %v3695_v38 }
 0x233   : > { %v2761_v48 = vadd.f32 %v4739_v46, %v2629_v45  ;;  %v2566_v49 = vmul.f32 %v4744_v56, %v1922_v47  ;;  %1960 = vmatmul.bf16.gmra.mxu1 %v3443_v42  ;;  %2120 = vmatmul.bf16.gmra.mxu3 %v3699_v43  ;;  %v4980_v43 = vld [vmem:[#allocation8] ss:$0 sm:$0xff] }
 0x235   : > { %v2889_v50 = vmax.f32 %v2761_v48, 0.0  ;;  %v2698_v51 = vadd.f32 %v4739_v46, %v2566_v49  ;;  %v1752_v0 = vpop.f32.mrf.mxu2 }
 0x236   : > { %v2081_v52 = vpop.f32.mrf.mxu3 }
 0x237   : > { %3017 = vst [vmem:[%s4505_s1 + $0x358] sm:$0xff] %v2889_v50  ;;  %v2826_v59 = vmax.f32 %v2698_v51, 0.0  ;;  %v2082_v53 = vadd.f32 %v2081_v52, %v1752_v0  ;;  %v1594_v54 = vpop.f32.mrf.mxu0 }
 0x238   : > { %v1923_v55 = vpop.f32.mrf.mxu1 }
 0x239   : > { %2954 = vst [vmem:[%s4505_s1 + $0x160] sm:$0xff] %v2826_v59  ;;  %v2630_v57 = vmul.f32 %v4744_v56, %v2082_v53  ;;  %v1924_v58 = vadd.f32 %v1923_v55, %v1594_v54 }
 0x23b   : > { %v2762_v62 = vadd.f32 %v4739_v46, %v2630_v57  ;;  %v2567_v63 = vmul.f32 %v4744_v56, %v1924_v58 }
 0x23d   : > { %v2890_v7 = vmax.f32 %v2762_v62, 0.0  ;;  %v2699_v8 = vadd.f32 %v4739_v46, %v2567_v63  ;;  %v1754_v9 = vpop.f32.mrf.mxu2 }
 0x23e   : > { %v2083_v10 = vpop.f32.mrf.mxu3 }
 0x23f   : > { %3018 = vst [vmem:[%s4505_s1 + $0x360] sm:$0xff] %v2890_v7  ;;  %v2827_v13 = vmax.f32 %v2699_v8, 0.0  ;;  %v2084_v14 = vadd.f32 %v2083_v10, %v1754_v9  ;;  %v1597_v15 = vpop.f32.mrf.mxu0 }
 0x240   : > { %v1926_v18 = vpop.f32.mrf.mxu1 }
 0x241   : > { %2955 = vst [vmem:[%s4505_s1 + $0x168] sm:$0xff] %v2827_v13  ;;  %v2631_v19 = vmul.f32 %v4744_v56, %v2084_v14  ;;  %v1927_v20 = vadd.f32 %v1926_v18, %v1597_v15 }
 0x242   : > { %1636 = vmatmul.bf16.gmra.mxu0 %v3447_v11  ;;  %1796 = vmatmul.bf16.gmra.mxu2 %v3703_v12 }
 0x243   : > { %v2763_v21 = vadd.f32 %v4739_v46, %v2631_v19  ;;  %v2568_v22 = vmul.f32 %v4744_v56, %v1927_v20  ;;  %1965 = vmatmul.bf16.gmra.mxu1 %v3451_v16  ;;  %2125 = vmatmul.bf16.gmra.mxu3 %v3707_v17 }
 0x245   : > { %v2891_v23 = vmax.f32 %v2763_v21, 0.0  ;;  %v2700_v24 = vadd.f32 %v4739_v46, %v2568_v22  ;;  %v1757_v25 = vpop.f32.mrf.mxu2 }
 0x246   : > { %v2086_v26 = vpop.f32.mrf.mxu3 }
 0x247   : > { %3019 = vst [vmem:[%s4505_s1 + $0x368] sm:$0xff] %v2891_v23  ;;  %v2828_v27 = vmax.f32 %v2700_v24, 0.0  ;;  %v2087_v28 = vadd.f32 %v2086_v26, %v1757_v25  ;;  %v1599_v29 = vpop.f32.mrf.mxu0 }
 0x248   : > { %v1928_v30 = vpop.f32.mrf.mxu1 }
 0x249   : > { %2956 = vst [vmem:[%s4505_s1 + $0x170] sm:$0xff] %v2828_v27  ;;  %v2632_v31 = vmul.f32 %v4744_v56, %v2087_v28  ;;  %v1929_v32 = vadd.f32 %v1928_v30, %v1599_v29 }
 0x24b   : > { %v2764_v34 = vadd.f32 %v4973_v33, %v2632_v31  ;;  %v2569_v35 = vmul.f32 %v4744_v56, %v1929_v32 }
 0x24d   : > { %v2892_v46 = vmax.f32 %v2764_v34, 0.0  ;;  %v2701_v36 = vadd.f32 %v4973_v33, %v2569_v35  ;;  %v1759_v37 = vpop.f32.mrf.mxu2 }
 0x24e   : > { %v2088_v38 = vpop.f32.mrf.mxu3 }
 0x24f   : > { %3020 = vst [vmem:[%s4505_s1 + $0x370] sm:$0xff] %v2892_v46  ;;  %v2829_v39 = vmax.f32 %v2701_v36, 0.0  ;;  %v2089_v40 = vadd.f32 %v2088_v38, %v1759_v37  ;;  %v1602_v41 = vpop.f32.mrf.mxu0 }
 0x250   : > { %v1931_v42 = vpop.f32.mrf.mxu1 }
 0x251   : > { %2957 = vst [vmem:[%s4505_s1 + $0x178] sm:$0xff] %v2829_v39  ;;  %v2633_v44 = vmul.f32 %v4980_v43, %v2089_v40  ;;  %v1932_v45 = vadd.f32 %v1931_v42, %v1602_v41 }
 0x253   : > { %v2765_v56 = vadd.f32 %v4973_v33, %v2633_v44  ;;  %v2570_v47 = vmul.f32 %v4980_v43, %v1932_v45 }
 0x255   : > { %v2893_v48 = vmax.f32 %v2765_v56, 0.0  ;;  %v2702_v49 = vadd.f32 %v4973_v33, %v2570_v47  ;;  %v1762_v50 = vpop.f32.mrf.mxu2 }
 0x256   : > { %v2091_v51 = vpop.f32.mrf.mxu3 }
 0x257   : > { %3021 = vst [vmem:[%s4505_s1 + $0x378] sm:$0xff] %v2893_v48  ;;  %v2830_v0 = vmax.f32 %v2702_v49, 0.0  ;;  %v2092_v52 = vadd.f32 %v2091_v51, %v1762_v50  ;;  %v1604_v59 = vpop.f32.mrf.mxu0 }
 0x258   : > { %v1933_v53 = vpop.f32.mrf.mxu1 }
 0x259   : > { %2958 = vst [vmem:[%s4505_s1 + $0x180] sm:$0xff] %v2830_v0  ;;  %v2634_v54 = vmul.f32 %v4980_v43, %v2092_v52  ;;  %v1934_v55 = vadd.f32 %v1933_v53, %v1604_v59 }
 0x25b   : > { %v2766_v57 = vadd.f32 %v4973_v33, %v2634_v54  ;;  %v2571_v58 = vmul.f32 %v4980_v43, %v1934_v55 }
 0x25d   : > { %v2894_v60 = vmax.f32 %v2766_v57, 0.0  ;;  %v2703_v61 = vadd.f32 %v4973_v33, %v2571_v58  ;;  %v1764_v62 = vpop.f32.mrf.mxu2 }
 0x25e   : > { %v2093_v63 = vpop.f32.mrf.mxu3 }
 0x25f   : > { %3022 = vst [vmem:[%s4505_s1 + $0x380] sm:$0xff] %v2894_v60  ;;  %v2831_v1 = vmax.f32 %v2703_v61, 0.0  ;;  %v2094_v2 = vadd.f32 %v2093_v63, %v1764_v62  ;;  %v1607_v3 = vpop.f32.mrf.mxu0 }
 0x260   : > { %v1936_v4 = vpop.f32.mrf.mxu1 }
 0x261   : > { %2959 = vst [vmem:[%s4505_s1 + $0x188] sm:$0xff] %v2831_v1  ;;  %v2635_v5 = vmul.f32 %v4980_v43, %v2094_v2  ;;  %v1937_v6 = vadd.f32 %v1936_v4, %v1607_v3 }
 0x263   : > { %v2767_v7 = vadd.f32 %v4973_v33, %v2635_v5  ;;  %v2572_v8 = vmul.f32 %v4980_v43, %v1937_v6 }
 0x265   : > { %v2895_v9 = vmax.f32 %v2767_v7, 0.0  ;;  %v2704_v10 = vadd.f32 %v4973_v33, %v2572_v8  ;;  %v1767_v11 = vpop.f32.mrf.mxu2 }
 0x266   : > { %v2096_v12 = vpop.f32.mrf.mxu3 }
 0x267   : > { %3023 = vst [vmem:[%s4505_s1 + $0x388] sm:$0xff] %v2895_v9  ;;  %v2832_v13 = vmax.f32 %v2704_v10, 0.0  ;;  %v2097_v14 = vadd.f32 %v2096_v12, %v1767_v11  ;;  %v1609_v15 = vpop.f32.mrf.mxu0 }
 0x268   : > { %v1938_v16 = vpop.f32.mrf.mxu1 }
 0x269   : > { %2960 = vst [vmem:[%s4505_s1 + $0x190] sm:$0xff] %v2832_v13  ;;  %v2636_v17 = vmul.f32 %v4980_v43, %v2097_v14  ;;  %v1939_v18 = vadd.f32 %v1938_v16, %v1609_v15 }
 0x26b   : > { %v2768_v19 = vadd.f32 %v4973_v33, %v2636_v17  ;;  %v2573_v20 = vmul.f32 %v4980_v43, %v1939_v18 }
 0x26d   : > { %v2896_v21 = vmax.f32 %v2768_v19, 0.0  ;;  %v2705_v22 = vadd.f32 %v4973_v33, %v2573_v20  ;;  %v1769_v23 = vpop.f32.mrf.mxu2 }
 0x26e   : > { %v2098_v24 = vpop.f32.mrf.mxu3 }
 0x26f   : > { %3024 = vst [vmem:[%s4505_s1 + $0x390] sm:$0xff] %v2896_v21  ;;  %v2833_v25 = vmax.f32 %v2705_v22, 0.0  ;;  %v2099_v26 = vadd.f32 %v2098_v24, %v1769_v23  ;;  %v1612_v27 = vpop.f32.mrf.mxu0 }
 0x270   : > { %v1941_v28 = vpop.f32.mrf.mxu1 }
 0x271   : > { %2961 = vst [vmem:[%s4505_s1 + $0x198] sm:$0xff] %v2833_v25  ;;  %v2637_v29 = vmul.f32 %v4980_v43, %v2099_v26  ;;  %v1942_v30 = vadd.f32 %v1941_v28, %v1612_v27 }
 0x273   : > { %v2769_v31 = vadd.f32 %v4973_v33, %v2637_v29  ;;  %v2574_v32 = vmul.f32 %v4980_v43, %v1942_v30 }
 0x275   : > { %v2897_v34 = vmax.f32 %v2769_v31, 0.0  ;;  %v2706_v35 = vadd.f32 %v4973_v33, %v2574_v32  ;;  %v1772_v46 = vpop.f32.mrf.mxu2 }
 0x276   : > { %v2101_v36 = vpop.f32.mrf.mxu3 }
 0x277   : > { %3025 = vst [vmem:[%s4505_s1 + $0x398] sm:$0xff] %v2897_v34  ;;  %v2834_v37 = vmax.f32 %v2706_v35, 0.0  ;;  %v2102_v38 = vadd.f32 %v2101_v36, %v1772_v46  ;;  %v1614_v39 = vpop.f32.mrf.mxu0 }
 0x278   : > { %v1943_v40 = vpop.f32.mrf.mxu1 }
 0x279   : > { %2962 = vst [vmem:[%s4505_s1 + $0x1a0] sm:$0xff] %v2834_v37  ;;  %v2638_v41 = vmul.f32 %v4980_v43, %v2102_v38  ;;  %v1944_v42 = vadd.f32 %v1943_v40, %v1614_v39 }
 0x27b   : > { %v2770_v44 = vadd.f32 %v4973_v33, %v2638_v41  ;;  %v2575_v45 = vmul.f32 %v4980_v43, %v1944_v42 }
 0x27d   : > { %v2898_v56 = vmax.f32 %v2770_v44, 0.0  ;;  %v2707_v47 = vadd.f32 %v4973_v33, %v2575_v45  ;;  %v1774_v48 = vpop.f32.mrf.mxu2 }
 0x27e   : > { %v2103_v49 = vpop.f32.mrf.mxu3 }
 0x27f   : > { %3026 = vst [vmem:[%s4505_s1 + $0x3a0] sm:$0xff] %v2898_v56  ;;  %v2835_v50 = vmax.f32 %v2707_v47, 0.0  ;;  %v2104_v51 = vadd.f32 %v2103_v49, %v1774_v48  ;;  %v1617_v0 = vpop.f32.mrf.mxu0 }
 0x280   : > { %v1946_v52 = vpop.f32.mrf.mxu1 }
 0x281   : > { %2963 = vst [vmem:[%s4505_s1 + $0x1a8] sm:$0xff] %v2835_v50  ;;  %v2639_v59 = vmul.f32 %v4980_v43, %v2104_v51  ;;  %v1947_v53 = vadd.f32 %v1946_v52, %v1617_v0 }
 0x283   : > { %v2771_v54 = vadd.f32 %v4973_v33, %v2639_v59  ;;  %v2576_v55 = vmul.f32 %v4980_v43, %v1947_v53 }
 0x285   : > { %v2899_v57 = vmax.f32 %v2771_v54, 0.0  ;;  %v2708_v58 = vadd.f32 %v4973_v33, %v2576_v55  ;;  %v1777_v60 = vpop.f32.mrf.mxu2 }
 0x286   : > { %v2106_v61 = vpop.f32.mrf.mxu3 }
 0x287   : > { %3027 = vst [vmem:[%s4505_s1 + $0x3a8] sm:$0xff] %v2899_v57  ;;  %v2836_v62 = vmax.f32 %v2708_v58, 0.0  ;;  %v2107_v63 = vadd.f32 %v2106_v61, %v1777_v60  ;;  %v1619_v1 = vpop.f32.mrf.mxu0 }
 0x288   : > { %v1948_v2 = vpop.f32.mrf.mxu1 }
 0x289   : > { %2964 = vst [vmem:[%s4505_s1 + $0x1b0] sm:$0xff] %v2836_v62  ;;  %v2640_v3 = vmul.f32 %v4980_v43, %v2107_v63  ;;  %v1949_v4 = vadd.f32 %v1948_v2, %v1619_v1 }
 0x28b   : > { %v2772_v5 = vadd.f32 %v4973_v33, %v2640_v3  ;;  %v2577_v6 = vmul.f32 %v4980_v43, %v1949_v4 }
 0x28d   : > { %v2900_v7 = vmax.f32 %v2772_v5, 0.0  ;;  %v2709_v8 = vadd.f32 %v4973_v33, %v2577_v6  ;;  %v1779_v9 = vpop.f32.mrf.mxu2 }
 0x28e   : > { %v2108_v10 = vpop.f32.mrf.mxu3 }
 0x28f   : > { %3028 = vst [vmem:[%s4505_s1 + $0x3b0] sm:$0xff] %v2900_v7  ;;  %v2837_v11 = vmax.f32 %v2709_v8, 0.0  ;;  %v2109_v12 = vadd.f32 %v2108_v10, %v1779_v9  ;;  %v1622_v13 = vpop.f32.mrf.mxu0 }
 0x290   : > { %v1951_v14 = vpop.f32.mrf.mxu1 }
 0x291   : > { %2965 = vst [vmem:[%s4505_s1 + $0x1b8] sm:$0xff] %v2837_v11  ;;  %v2641_v15 = vmul.f32 %v4980_v43, %v2109_v12  ;;  %v1952_v16 = vadd.f32 %v1951_v14, %v1622_v13 }
 0x293   : > { %v2773_v17 = vadd.f32 %v4973_v33, %v2641_v15  ;;  %v2578_v18 = vmul.f32 %v4980_v43, %v1952_v16 }
 0x295   : > { %v2901_v19 = vmax.f32 %v2773_v17, 0.0  ;;  %v2710_v20 = vadd.f32 %v4973_v33, %v2578_v18  ;;  %v1782_v21 = vpop.f32.mrf.mxu2 }
 0x296   : > { %v2111_v22 = vpop.f32.mrf.mxu3 }
 0x297   : > { %3029 = vst [vmem:[%s4505_s1 + $0x3b8] sm:$0xff] %v2901_v19  ;;  %v2838_v23 = vmax.f32 %v2710_v20, 0.0  ;;  %v2112_v24 = vadd.f32 %v2111_v22, %v1782_v21  ;;  %v1624_v25 = vpop.f32.mrf.mxu0 }
 0x298   : > { %v1953_v26 = vpop.f32.mrf.mxu1 }
 0x299   : > { %2966 = vst [vmem:[%s4505_s1 + $0x1c0] sm:$0xff] %v2838_v23  ;;  %v2642_v27 = vmul.f32 %v4980_v43, %v2112_v24  ;;  %v1954_v28 = vadd.f32 %v1953_v26, %v1624_v25 }
 0x29b   : > { %v2774_v29 = vadd.f32 %v4973_v33, %v2642_v27  ;;  %v2579_v30 = vmul.f32 %v4980_v43, %v1954_v28 }
 0x29d   : > { %v2902_v31 = vmax.f32 %v2774_v29, 0.0  ;;  %v2711_v32 = vadd.f32 %v4973_v33, %v2579_v30  ;;  %v1784_v34 = vpop.f32.mrf.mxu2 }
 0x29e   : > { %v2113_v35 = vpop.f32.mrf.mxu3 }
 0x29f   : > { %3030 = vst [vmem:[%s4505_s1 + $0x3c0] sm:$0xff] %v2902_v31  ;;  %v2839_v46 = vmax.f32 %v2711_v32, 0.0  ;;  %v2114_v36 = vadd.f32 %v2113_v35, %v1784_v34  ;;  %v1627_v37 = vpop.f32.mrf.mxu0 }
 0x2a0   : > { %v1956_v38 = vpop.f32.mrf.mxu1 }
 0x2a1   : > { %2967 = vst [vmem:[%s4505_s1 + $0x1c8] sm:$0xff] %v2839_v46  ;;  %v2643_v39 = vmul.f32 %v4980_v43, %v2114_v36  ;;  %v1957_v40 = vadd.f32 %v1956_v38, %v1627_v37 }
 0x2a3   : > { %v2775_v41 = vadd.f32 %v4973_v33, %v2643_v39  ;;  %v2580_v42 = vmul.f32 %v4980_v43, %v1957_v40 }
 0x2a5   : > { %v2903_v44 = vmax.f32 %v2775_v41, 0.0  ;;  %v2712_v45 = vadd.f32 %v4973_v33, %v2580_v42  ;;  %v1787_v56 = vpop.f32.mrf.mxu2 }
 0x2a6   : > { %v2116_v47 = vpop.f32.mrf.mxu3 }
 0x2a7   : > { %3031 = vst [vmem:[%s4505_s1 + $0x3c8] sm:$0xff] %v2903_v44  ;;  %v2840_v48 = vmax.f32 %v2712_v45, 0.0  ;;  %v2117_v49 = vadd.f32 %v2116_v47, %v1787_v56  ;;  %v1629_v50 = vpop.f32.mrf.mxu0 }
 0x2a8   : > { %v1958_v51 = vpop.f32.mrf.mxu1 }
 0x2a9   : > { %2968 = vst [vmem:[%s4505_s1 + $0x1d0] sm:$0xff] %v2840_v48  ;;  %v2644_v0 = vmul.f32 %v4980_v43, %v2117_v49  ;;  %v1959_v52 = vadd.f32 %v1958_v51, %v1629_v50 }
 0x2ab   : > { %v2776_v59 = vadd.f32 %v4973_v33, %v2644_v0  ;;  %v2581_v53 = vmul.f32 %v4980_v43, %v1959_v52 }
 0x2ad   : > { %v2904_v54 = vmax.f32 %v2776_v59, 0.0  ;;  %v2713_v55 = vadd.f32 %v4973_v33, %v2581_v53  ;;  %v1789_v57 = vpop.f32.mrf.mxu2 }
 0x2ae   : > { %v2118_v58 = vpop.f32.mrf.mxu3 }
 0x2af   : > { %3032 = vst [vmem:[%s4505_s1 + $0x3d0] sm:$0xff] %v2904_v54  ;;  %v2841_v60 = vmax.f32 %v2713_v55, 0.0  ;;  %v2119_v61 = vadd.f32 %v2118_v58, %v1789_v57  ;;  %v1632_v62 = vpop.f32.mrf.mxu0 }
 0x2b0   : > { %v1961_v63 = vpop.f32.mrf.mxu1 }
 0x2b1   : > { %2969 = vst [vmem:[%s4505_s1 + $0x1d8] sm:$0xff] %v2841_v60  ;;  %v2645_v1 = vmul.f32 %v4980_v43, %v2119_v61  ;;  %v1962_v2 = vadd.f32 %v1961_v63, %v1632_v62 }
 0x2b3   : > { %v2777_v3 = vadd.f32 %v4973_v33, %v2645_v1  ;;  %v2582_v4 = vmul.f32 %v4980_v43, %v1962_v2 }
 0x2b5   : > { %v2905_v5 = vmax.f32 %v2777_v3, 0.0  ;;  %v2714_v6 = vadd.f32 %v4973_v33, %v2582_v4  ;;  %v1792_v7 = vpop.f32.mrf.mxu2 }
 0x2b6   : > { %v2121_v8 = vpop.f32.mrf.mxu3 }
 0x2b7   : > { %3033 = vst [vmem:[%s4505_s1 + $0x3d8] sm:$0xff] %v2905_v5  ;;  %v2842_v9 = vmax.f32 %v2714_v6, 0.0  ;;  %v2122_v10 = vadd.f32 %v2121_v8, %v1792_v7  ;;  %v1634_v11 = vpop.f32.mrf.mxu0 }
 0x2b8   : > { %v1963_v12 = vpop.f32.mrf.mxu1 }
 0x2b9   : > { %2970 = vst [vmem:[%s4505_s1 + $0x1e0] sm:$0xff] %v2842_v9  ;;  %v2646_v13 = vmul.f32 %v4980_v43, %v2122_v10  ;;  %v1964_v14 = vadd.f32 %v1963_v12, %v1634_v11 }
 0x2bb   : > { %v2778_v15 = vadd.f32 %v4973_v33, %v2646_v13  ;;  %v2583_v16 = vmul.f32 %v4980_v43, %v1964_v14 }
 0x2bd   : > { %v2906_v17 = vmax.f32 %v2778_v15, 0.0  ;;  %v2715_v18 = vadd.f32 %v4973_v33, %v2583_v16  ;;  %v1794_v19 = vpop.f32.mrf.mxu2 }
 0x2be   : > { %v2123_v20 = vpop.f32.mrf.mxu3 }
 0x2bf   : > { %3034 = vst [vmem:[%s4505_s1 + $0x3e0] sm:$0xff] %v2906_v17  ;;  %v2843_v21 = vmax.f32 %v2715_v18, 0.0  ;;  %v2124_v22 = vadd.f32 %v2123_v20, %v1794_v19  ;;  %v1637_v23 = vpop.f32.mrf.mxu0 }
 0x2c0   : > { %v1966_v24 = vpop.f32.mrf.mxu1 }
 0x2c1   : > { %2971 = vst [vmem:[%s4505_s1 + $0x1e8] sm:$0xff] %v2843_v21  ;;  %v2647_v25 = vmul.f32 %v4980_v43, %v2124_v22  ;;  %v1967_v26 = vadd.f32 %v1966_v24, %v1637_v23 }
 0x2c3   : > { %v2779_v27 = vadd.f32 %v4973_v33, %v2647_v25  ;;  %v2584_v28 = vmul.f32 %v4980_v43, %v1967_v26 }
 0x2c5   : > { %v2907_v29 = vmax.f32 %v2779_v27, 0.0  ;;  %v2716_v30 = vadd.f32 %v4973_v33, %v2584_v28  ;;  %v1797_v31 = vpop.f32.mrf.mxu2 }
 0x2c6   : > { %v2126_v32 = vpop.f32.mrf.mxu3 }
 0x2c7   : > { %3035 = vst [vmem:[%s4505_s1 + $0x3e8] sm:$0xff] %v2907_v29  ;;  %v2844_v34 = vmax.f32 %v2716_v30, 0.0  ;;  %v2127_v35 = vadd.f32 %v2126_v32, %v1797_v31  ;;  %v1639_v46 = vpop.f32.mrf.mxu0 }
 0x2c8   : > { %v1968_v36 = vpop.f32.mrf.mxu1 }
 0x2c9   : > { %2972 = vst [vmem:[%s4505_s1 + $0x1f0] sm:$0xff] %v2844_v34  ;;  %v2648_v37 = vmul.f32 %v4980_v43, %v2127_v35  ;;  %v1969_v38 = vadd.f32 %v1968_v36, %v1639_v46 }
 0x2cb   : > { %v2780_v39 = vadd.f32 %v4973_v33, %v2648_v37  ;;  %v2585_v40 = vmul.f32 %v4980_v43, %v1969_v38 }
 0x2cd   : > { %v2908_v41 = vmax.f32 %v2780_v39, 0.0  ;;  %v2717_v42 = vadd.f32 %v4973_v33, %v2585_v40  ;;  %v1799_v44 = vpop.f32.mrf.mxu2 }
 0x2ce   : > { %v2128_v45 = vpop.f32.mrf.mxu3 }
 0x2cf   : > { %3036 = vst [vmem:[%s4505_s1 + $0x3f0] sm:$0xff] %v2908_v41  ;;  %v2845_v56 = vmax.f32 %v2717_v42, 0.0  ;;  %v2129_v47 = vadd.f32 %v2128_v45, %v1799_v44 }
 0x2d1   : > { %2973 = vst [vmem:[%s4505_s1 + $0x1f8] sm:$0xff] %v2845_v56  ;;  %v2649_v48 = vmul.f32 %v4980_v43, %v2129_v47 }
 0x2d3   : > { %v2781_v49 = vadd.f32 %v4973_v33, %v2649_v48 }
 0x2d5   : > { %v2909_v50 = vmax.f32 %v2781_v49, 0.0 }
 0x2d7   : > { %3037 = vst [vmem:[%s4505_s1 + $0x3f8] sm:$0xff] %v2909_v50 }
 0x2d8   : > { %4192 = shalt.err (!%p4189_p12)
}
 0x2d9   : > { %s4264_s6 = smov 128   ;;  %s4265_s7 = smov 8  }
 0x2da   : > { %3954 = dma.vmem_to_hbm [thread:$0]  (%p4385_p3), %s3053_s8, 16384, %s3055_s18, %s3039_s10, %s4264_s6, %s4264_s6, %s4265_s7  }
 0x2db PF: > { %p3981_p13 = scmp.ge.s32.totalorder %s4255_s20, 2  ;;  %s3069_s11 = sand.u32 1, %s4235_s15  }
 0x2dc   : > { %s3070_s13 = scalar_lea.sflag [#allocation5], %s3069_s11 }
 0x2dd   : > { %p3971_p0 = pnand %p3981_p13, %p4340_p6 }
 0x2df   : > { %p3972_p5 = pneg %p3971_p0 }
 0x2e1   : > { %4230 = dma.done.wait (%p3972_p5), %s3070_s13, 16384  }
 0x2e2   : > { %4232 = vsyncadd (%p3972_p5), %s3070_s13, 4294950912  ;;  %s22_s20 = sadd.s32 1, %s4255_s20   ;;  %s5136_s15 = smov %s4239_s16 }
 0x2e3   : > { %p19_p7 = scmp.ge.s32.totalorder %s22_s20, 16   ;;  %s5137_s16 = smov %s4243_s17 }
 0x2e4   : > { %s5138_s17 = smov %s4394_s12  ;;  %s5139_s18 = smov %s4251_s19 }
 0x2e5   : > { %s5140_s19 = smov %s5142_s29  ;;  %21 = sbr.rel (!%p19_p7) target bundleno = 11 (0xb), region = 104 }
 0x2ea   :  { %3076 = vsyncpa [#allocation4], 1 }
 0x2eb   :  { %3078 = vsyncpa [#allocation4 + $0x1], 1 }
 0x2ec   :  { %3079 = vsyncpa [#allocation7], 1 }
 0x2ed   :  { %3080 = vsyncpa [#allocation10], 1 }
 0x2ee   :  { %3081 = vsyncpa [#allocation5], 1 }
 0x2ef   :  { %3083 = vsyncpa [#allocation5 + $0x1], 1 }

</bundles_post_ra>
